<compile_context>
chip_gen: v7x
topology: tpu7x:2x2x1
jax: 0.10.0
libtpu: 0.0.40
codegen_flags: <defaults>
</compile_context>

<pallas_src>
import functools

import jax
import jax.numpy as jnp
from jax.experimental import pallas as pl
from jax.experimental.pallas import tpu as pltpu


def _multi_hash_kernel(a_ref, b_ref, x_ref, tbl_ref, out_ref, *,
                       bucket_size, bucket_chunk, hashes_per_group,
                       embedding_dim):
    """Grid step (g, k): hash group g, bucket chunk [k*TBS, (k+1)*TBS).

    a_ref, b_ref : SMEM (E,) int32 scalar-prefetch hash coefficients
    x_ref        : VMEM (B, F, 1) int32 keys (resident across the grid)
    tbl_ref      : VMEM (TBS, EG*D) f32 lane-dense table chunk for group g
    out_ref      : VMEM (B, EG*D) f32 lane-dense accumulator, resident across k
    """
    g = pl.program_id(0)
    k = pl.program_id(1)
    x = x_ref[...]                                        # (B, F, 1) int32
    B, F, _ = x.shape
    EG = hashes_per_group
    D = embedding_dim
    TBS = bucket_chunk

    # Bucket ids covered by this chunk (hoisted, shared by every hash in the group).
    bucket_iota = (jax.lax.broadcasted_iota(jnp.int32, (1, 1, TBS), 2)
                   + k * TBS)                             # (1, 1, TBS)

    pow2 = (bucket_size & (bucket_size - 1)) == 0         # static Python bool

    partials = []
    for e in range(EG):                                   # EG small & static: unrolled
        a = a_ref[g * EG + e]
        b = b_ref[g * EG + e]
        h = a * x + b                                     # (B, F, 1) int32
        if pow2:
            # Exact even under int32 wrap-around (low bits preserved): 2 VALU ops.
            idx = h & (bucket_size - 1)
        else:
            # TODO(synk): non-pow2 modulo can diverge from torch's float64 hash
            # if a*x+b overflows int32; widen the hash math upstream for huge keys.
            idx = h % bucket_size

        # counts[r, t] = #features of row r hashing into bucket k*TBS + t.
        # One vectorized lane-broadcast compare, one mask->f32 convert, one
        # XLU sublane reduce over F; never touches the VALU per feature.
        cmp = idx == bucket_iota                          # (B, F, TBS) mask
        counts = cmp.astype(jnp.float32).sum(axis=1)      # (B, TBS) f32

        # Embedding lookup + sum(dim=1) restricted to this chunk
        # == counts @ table_chunk (f32 MXU matmul, exact f32 accumulation).
        partials.append(
            jnp.dot(counts, tbl_ref[:, e * D:(e + 1) * D],
                    preferred_element_type=jnp.float32,
                    precision=jax.lax.Precision.HIGHEST))  # (B, D)

    # One lane-dense (B, EG*D) slab -> single full-width store / accumulate.
    chunk_out = (partials[0] if EG == 1
                 else jnp.concatenate(partials, axis=-1))

    @pl.when(k == 0)
    def _():
        out_ref[...] = chunk_out

    @pl.when(k != 0)
    def _():
        out_ref[...] += chunk_out


def _pick_hash_group(embedding_count, embedding_dim):
    """Hashes per parallel group: keep each group's table slab lane-dense
    (a multiple of 128 lanes) while evenly dividing E; else fuse all hashes."""
    if embedding_count * embedding_dim <= 128:
        return embedding_count
    for g in range(1, embedding_count):
        if embedding_count % g == 0 and (g * embedding_dim) % 128 == 0:
            return g
    return embedding_count


def _pick_bucket_chunk(bucket_size):
    """Largest sublane-aligned divisor of bucket_size not exceeding 2048 rows."""
    if bucket_size <= 2048:
        return bucket_size
    cands = [c for c in range(8, 2049, 8) if bucket_size % c == 0]
    return max(cands) if cands else bucket_size


def multi_hash_embedding(x, tables, a_list, b_list, bucket_size, *,
                         bucket_chunk=None):
    """x: (B, F) int32; tables: (E, bucket_size, D) f32; a/b_list: (E,) int32."""
    E, BS, D = tables.shape
    B, F = x.shape
    assert BS == bucket_size

    if bucket_chunk is None:
        bucket_chunk = _pick_bucket_chunk(BS)
    assert BS % bucket_chunk == 0
    n_chunks = BS // bucket_chunk

    eg = _pick_hash_group(E, D)
    n_groups = E // eg

    # Lane-dense table layout: (E, BS, D) -> (BS, E*D). D=32 tiles would be
    # lane-padded to 128 in HBM/VMEM otherwise (~4x wasted table DMA bytes).
    tables_ld = jnp.transpose(tables, (1, 0, 2)).reshape(BS, E * D)

    # Keys pre-shaped to (B, F, 1) so the in-kernel bucket compare broadcasts
    # along lanes with no relayout (F lives on sublanes, buckets on lanes).
    x3 = x.reshape(B, F, 1)

    # TODO(synk): for very large bucket_size with B*F << BS, an index-gather path
    # (hash via scalar prefetch + per-row DMA gather of only the E*B*F needed rows)
    # beats streaming the whole table; not needed at these module-scale sizes.

    kernel = functools.partial(
        _multi_hash_kernel,
        bucket_size=bucket_size,
        bucket_chunk=bucket_chunk,
        hashes_per_group=eg,
        embedding_dim=D,
    )

    # Explicit VMEM budget: double-buffered table chunk + keys + resident
    # accumulator, plus headroom for compiler scratch. Matters on v5e's 16 MiB
    # scoped default; stays far under v7x's 64 MiB physical VMEM.
    table_block = bucket_chunk * eg * D * 4
    out_block = B * eg * D * 4
    x_block = B * F * 4
    vmem_limit = int(2 * (table_block + out_block + x_block) + (12 << 20))

    out = pl.pallas_call(
        kernel,
        out_shape=jax.ShapeDtypeStruct((B, E * D), jnp.float32),
        grid_spec=pltpu.PrefetchScalarGridSpec(
            num_scalar_prefetch=2,
            grid=(n_groups, n_chunks),
            in_specs=[
                # keys: same block for every grid step (stays resident in VMEM)
                pl.BlockSpec((B, F, 1), lambda g, k, a, b: (0, 0, 0)),
                # lane-dense table: chunk k rows, group g's EG*D columns
                pl.BlockSpec((bucket_chunk, eg * D), lambda g, k, a, b: (k, g)),
            ],
            # accumulator: same output block across the whole bucket reduction
            out_specs=pl.BlockSpec((B, eg * D), lambda g, k, a, b: (0, g)),
        ),
        compiler_params=pltpu.CompilerParams(
            # hash-group axis shardable across v7x's two TensorCores;
            # bucket axis is a reduction into the resident accumulator.
            dimension_semantics=("parallel", "arbitrary"),
            vmem_limit_bytes=vmem_limit,
        ),
    )(a_list, b_list, x3, tables_ld)

    # MultiHashEmbedding.forward returns a List[Tensor], one (B, D) per hash.
    return [out[:, e * D:(e + 1) * D] for e in range(E)]


def reference(x, tables, a_list, b_list, bucket_size):
    outs = []
    for e in range(tables.shape[0]):
        idx = (a_list[e] * x + b_list[e]) % bucket_size           # (B, F)
        emb = jnp.take(tables[e], idx, axis=0)                    # (B, F, D)
        outs.append(emb.sum(axis=1).astype(jnp.float32))          # (B, D)
    return outs


if __name__ == "__main__":
    # Small, module-consistent shapes.
    bucket_size = 128
    embedding_dim = 32
    embedding_count = 4
    batch = 8
    num_features = 8   # x is (batch, num_features) integer keys; sum(dim=1) reduces features

    key = jax.random.PRNGKey(0)
    k_a, k_b, k_tbl, k_x = jax.random.split(key, 4)

    # a_list / b_list: distinct draws from range(2*embedding_count) (torch stores them
    # as float64 Parameters; the hash math is integer so we keep int32).
    a_list = jax.random.permutation(
        k_a, jnp.arange(2 * embedding_count, dtype=jnp.int32))[:embedding_count]
    b_list = jax.random.permutation(
        k_b, jnp.arange(2 * embedding_count, dtype=jnp.int32))[:embedding_count]

    # Embedding tables: nn.Embedding default init is N(0, 1).
    tables = jax.random.normal(
        k_tbl, (embedding_count, bucket_size, embedding_dim), dtype=jnp.float32)

    # Integer keys (nonnegative).
    x = jax.random.randint(k_x, (batch, num_features), 0, 1000, dtype=jnp.int32)

    outs = multi_hash_embedding(x, tables, a_list, b_list, bucket_size)
    outs = [jax.block_until_ready(o) for o in outs]

    refs = reference(x, tables, a_list, b_list, bucket_size)
    for o, r in zip(outs, refs):
        assert o.shape == (batch, embedding_dim)
        assert jnp.allclose(o, r, atol=1e-5, rtol=1e-5), "mismatch vs reference"

    print("KERNEL_OK")
</pallas_src>

<mosaic_0001>
module attributes {stable_mosaic.version = 11 : i64} {
  func.func @_multi_hash_kernel(%arg0: i32, %arg1: i32, %arg2: memref<4xi32, #tpu.memory_space<smem>>, %arg3: memref<4xi32, #tpu.memory_space<smem>>, %arg4: memref<8x8x1xi32, #tpu.memory_space<vmem>>, %arg5: memref<128x128xf32, #tpu.memory_space<vmem>>, %arg6: memref<8x128xf32, #tpu.memory_space<vmem>>) attributes {dimension_semantics = [#tpu.dimension_semantics<parallel>, #tpu.dimension_semantics<arbitrary>], iteration_bounds = array<i64: 1, 1>, scalar_prefetch = 2 : i64, scratch_operands = 0 : i64, tpu.core_type = #tpu.core_type<tc>, window_params = [{pipeline_mode = #tpu.pipeline_mode<synchronous>, transform_indices = @transform_0, window_bounds = array<i64: 8, 8, 1>}, {transform_indices = @transform_1, window_bounds = array<i64: 128, 128>}, {transform_indices = @transform_2, window_bounds = array<i64: 8, 128>}]} {
    %c0 = arith.constant 0 : index
    %c0_0 = arith.constant 0 : index
    %c0_1 = arith.constant 0 : index
    %0 = vector.load %arg4[%c0, %c0_0, %c0_1] : memref<8x8x1xi32, #tpu.memory_space<vmem>>, vector<8x8x1xi32>
    %1 = tpu.iota {dimensions = array<i32: 2>} : vector<1x1x128xi32>
    %c128_i32 = arith.constant 128 : i32
    %2 = arith.muli %arg1, %c128_i32 : i32
    %3 = vector.broadcast %2 : i32 to vector<1x1x128xi32>
    %4 = arith.addi %1, %3 : vector<1x1x128xi32>
    %c4_i32 = arith.constant 4 : i32
    %5 = arith.muli %arg0, %c4_i32 : i32
    %c0_i32 = arith.constant 0 : i32
    %6 = arith.addi %5, %c0_i32 : i32
    %7 = arith.index_cast %6 : i32 to index
    %8 = memref.load %arg2[%7] : memref<4xi32, #tpu.memory_space<smem>>
    %c4_i32_2 = arith.constant 4 : i32
    %9 = arith.muli %arg0, %c4_i32_2 : i32
    %c0_i32_3 = arith.constant 0 : i32
    %10 = arith.addi %9, %c0_i32_3 : i32
    %11 = arith.index_cast %10 : i32 to index
    %12 = memref.load %arg3[%11] : memref<4xi32, #tpu.memory_space<smem>>
    %13 = vector.broadcast %8 : i32 to vector<8x8x1xi32>
    %14 = arith.muli %13, %0 : vector<8x8x1xi32>
    %15 = vector.broadcast %12 : i32 to vector<8x8x1xi32>
    %16 = arith.addi %14, %15 : vector<8x8x1xi32>
    %c127_i32 = arith.constant 127 : i32
    %17 = vector.broadcast %c127_i32 : i32 to vector<8x8x1xi32>
    %18 = arith.andi %16, %17 : vector<8x8x1xi32>
    %19 = vector.broadcast %18 : vector<8x8x1xi32> to vector<8x8x128xi32>
    %20 = vector.broadcast %4 : vector<1x1x128xi32> to vector<8x8x128xi32>
    %21 = arith.cmpi eq, %19, %20 : vector<8x8x128xi32>
    %22 = arith.extui %21 : vector<8x8x128xi1> to vector<8x8x128xi32>
    %23 = arith.sitofp %22 : vector<8x8x128xi32> to vector<8x8x128xf32>
    %cst = arith.constant dense<0.000000e+00> : vector<8x128xf32>
    %24 = vector.multi_reduction <add>, %23, %cst [1] : vector<8x8x128xf32> to vector<8x128xf32>
    %c0_4 = arith.constant 0 : index
    %c0_5 = arith.constant 0 : index
    %25 = vector.load %arg5[%c0_4, %c0_5] : memref<128x128xf32, #tpu.memory_space<vmem>>, vector<128x32xf32>
    %cst_6 = arith.constant dense<0.000000e+00> : vector<8x32xf32>
    %26 = tpu.matmul %24, %25, %cst_6 {dimension_numbers = #tpu.dot_dimension_numbers<[1], [0], [0], [1], [0, 0, 1, 1], [], []>, precision = #tpu.contract_precision<fp32>} : vector<8x128xf32>, vector<128x32xf32>, vector<8x32xf32> -> vector<8x32xf32>
    %c4_i32_7 = arith.constant 4 : i32
    %27 = arith.muli %arg0, %c4_i32_7 : i32
    %c1_i32 = arith.constant 1 : i32
    %28 = arith.addi %27, %c1_i32 : i32
    %29 = arith.index_cast %28 : i32 to index
    %30 = memref.load %arg2[%29] : memref<4xi32, #tpu.memory_space<smem>>
    %c4_i32_8 = arith.constant 4 : i32
    %31 = arith.muli %arg0, %c4_i32_8 : i32
    %c1_i32_9 = arith.constant 1 : i32
    %32 = arith.addi %31, %c1_i32_9 : i32
    %33 = arith.index_cast %32 : i32 to index
    %34 = memref.load %arg3[%33] : memref<4xi32, #tpu.memory_space<smem>>
    %35 = vector.broadcast %30 : i32 to vector<8x8x1xi32>
    %36 = arith.muli %35, %0 : vector<8x8x1xi32>
    %37 = vector.broadcast %34 : i32 to vector<8x8x1xi32>
    %38 = arith.addi %36, %37 : vector<8x8x1xi32>
    %c127_i32_10 = arith.constant 127 : i32
    %39 = vector.broadcast %c127_i32_10 : i32 to vector<8x8x1xi32>
    %40 = arith.andi %38, %39 : vector<8x8x1xi32>
    %41 = vector.broadcast %40 : vector<8x8x1xi32> to vector<8x8x128xi32>
    %42 = vector.broadcast %4 : vector<1x1x128xi32> to vector<8x8x128xi32>
    %43 = arith.cmpi eq, %41, %42 : vector<8x8x128xi32>
    %44 = arith.extui %43 : vector<8x8x128xi1> to vector<8x8x128xi32>
    %45 = arith.sitofp %44 : vector<8x8x128xi32> to vector<8x8x128xf32>
    %cst_11 = arith.constant dense<0.000000e+00> : vector<8x128xf32>
    %46 = vector.multi_reduction <add>, %45, %cst_11 [1] : vector<8x8x128xf32> to vector<8x128xf32>
    %c0_12 = arith.constant 0 : index
    %c32 = arith.constant 32 : index
    %47 = vector.load %arg5[%c0_12, %c32] : memref<128x128xf32, #tpu.memory_space<vmem>>, vector<128x32xf32>
    %cst_13 = arith.constant dense<0.000000e+00> : vector<8x32xf32>
    %48 = tpu.matmul %46, %47, %cst_13 {dimension_numbers = #tpu.dot_dimension_numbers<[1], [0], [0], [1], [0, 0, 1, 1], [], []>, precision = #tpu.contract_precision<fp32>} : vector<8x128xf32>, vector<128x32xf32>, vector<8x32xf32> -> vector<8x32xf32>
    %c4_i32_14 = arith.constant 4 : i32
    %49 = arith.muli %arg0, %c4_i32_14 : i32
    %c2_i32 = arith.constant 2 : i32
    %50 = arith.addi %49, %c2_i32 : i32
    %51 = arith.index_cast %50 : i32 to index
    %52 = memref.load %arg2[%51] : memref<4xi32, #tpu.memory_space<smem>>
    %c4_i32_15 = arith.constant 4 : i32
    %53 = arith.muli %arg0, %c4_i32_15 : i32
    %c2_i32_16 = arith.constant 2 : i32
    %54 = arith.addi %53, %c2_i32_16 : i32
    %55 = arith.index_cast %54 : i32 to index
    %56 = memref.load %arg3[%55] : memref<4xi32, #tpu.memory_space<smem>>
    %57 = vector.broadcast %52 : i32 to vector<8x8x1xi32>
    %58 = arith.muli %57, %0 : vector<8x8x1xi32>
    %59 = vector.broadcast %56 : i32 to vector<8x8x1xi32>
    %60 = arith.addi %58, %59 : vector<8x8x1xi32>
    %c127_i32_17 = arith.constant 127 : i32
    %61 = vector.broadcast %c127_i32_17 : i32 to vector<8x8x1xi32>
    %62 = arith.andi %60, %61 : vector<8x8x1xi32>
    %63 = vector.broadcast %62 : vector<8x8x1xi32> to vector<8x8x128xi32>
    %64 = vector.broadcast %4 : vector<1x1x128xi32> to vector<8x8x128xi32>
    %65 = arith.cmpi eq, %63, %64 : vector<8x8x128xi32>
    %66 = arith.extui %65 : vector<8x8x128xi1> to vector<8x8x128xi32>
    %67 = arith.sitofp %66 : vector<8x8x128xi32> to vector<8x8x128xf32>
    %cst_18 = arith.constant dense<0.000000e+00> : vector<8x128xf32>
    %68 = vector.multi_reduction <add>, %67, %cst_18 [1] : vector<8x8x128xf32> to vector<8x128xf32>
    %c0_19 = arith.constant 0 : index
    %c64 = arith.constant 64 : index
    %69 = vector.load %arg5[%c0_19, %c64] : memref<128x128xf32, #tpu.memory_space<vmem>>, vector<128x32xf32>
    %cst_20 = arith.constant dense<0.000000e+00> : vector<8x32xf32>
    %70 = tpu.matmul %68, %69, %cst_20 {dimension_numbers = #tpu.dot_dimension_numbers<[1], [0], [0], [1], [0, 0, 1, 1], [], []>, precision = #tpu.contract_precision<fp32>} : vector<8x128xf32>, vector<128x32xf32>, vector<8x32xf32> -> vector<8x32xf32>
    %c4_i32_21 = arith.constant 4 : i32
    %71 = arith.muli %arg0, %c4_i32_21 : i32
    %c3_i32 = arith.constant 3 : i32
    %72 = arith.addi %71, %c3_i32 : i32
    %73 = arith.index_cast %72 : i32 to index
    %74 = memref.load %arg2[%73] : memref<4xi32, #tpu.memory_space<smem>>
    %c4_i32_22 = arith.constant 4 : i32
    %75 = arith.muli %arg0, %c4_i32_22 : i32
    %c3_i32_23 = arith.constant 3 : i32
    %76 = arith.addi %75, %c3_i32_23 : i32
    %77 = arith.index_cast %76 : i32 to index
    %78 = memref.load %arg3[%77] : memref<4xi32, #tpu.memory_space<smem>>
    %79 = vector.broadcast %74 : i32 to vector<8x8x1xi32>
    %80 = arith.muli %79, %0 : vector<8x8x1xi32>
    %81 = vector.broadcast %78 : i32 to vector<8x8x1xi32>
    %82 = arith.addi %80, %81 : vector<8x8x1xi32>
    %c127_i32_24 = arith.constant 127 : i32
    %83 = vector.broadcast %c127_i32_24 : i32 to vector<8x8x1xi32>
    %84 = arith.andi %82, %83 : vector<8x8x1xi32>
    %85 = vector.broadcast %84 : vector<8x8x1xi32> to vector<8x8x128xi32>
    %86 = vector.broadcast %4 : vector<1x1x128xi32> to vector<8x8x128xi32>
    %87 = arith.cmpi eq, %85, %86 : vector<8x8x128xi32>
    %88 = arith.extui %87 : vector<8x8x128xi1> to vector<8x8x128xi32>
    %89 = arith.sitofp %88 : vector<8x8x128xi32> to vector<8x8x128xf32>
    %cst_25 = arith.constant dense<0.000000e+00> : vector<8x128xf32>
    %90 = vector.multi_reduction <add>, %89, %cst_25 [1] : vector<8x8x128xf32> to vector<8x128xf32>
    %c0_26 = arith.constant 0 : index
    %c96 = arith.constant 96 : index
    %91 = vector.load %arg5[%c0_26, %c96] : memref<128x128xf32, #tpu.memory_space<vmem>>, vector<128x32xf32>
    %cst_27 = arith.constant dense<0.000000e+00> : vector<8x32xf32>
    %92 = tpu.matmul %90, %91, %cst_27 {dimension_numbers = #tpu.dot_dimension_numbers<[1], [0], [0], [1], [0, 0, 1, 1], [], []>, precision = #tpu.contract_precision<fp32>} : vector<8x128xf32>, vector<128x32xf32>, vector<8x32xf32> -> vector<8x32xf32>
    %93 = tpu.concatenate %26, %48, %70, %92 in 1 : vector<8x32xf32>, vector<8x32xf32>, vector<8x32xf32>, vector<8x32xf32> -> vector<8x128xf32>
    %c0_i32_28 = arith.constant 0 : i32
    %94 = arith.cmpi eq, %arg1, %c0_i32_28 : i32
    %95 = arith.extui %94 : i1 to i32
    %c0_i32_29 = arith.constant 0 : i32
    %96 = arith.cmpi ne, %95, %c0_i32_29 : i32
    scf.if %96 {
      %c0_32 = arith.constant 0 : index
      %c0_33 = arith.constant 0 : index
      %100 = vector.load %arg6[%c0_32, %c0_33] : memref<8x128xf32, #tpu.memory_space<vmem>>, vector<8x128xf32>
      tpu.vector_store %arg6[%c0_32, %c0_33], %93 {strides = array<i32>} : memref<8x128xf32, #tpu.memory_space<vmem>>, vector<8x128xf32>,
    } else {
    }
    %c0_i32_30 = arith.constant 0 : i32
    %97 = arith.cmpi ne, %arg1, %c0_i32_30 : i32
    %98 = arith.extui %97 : i1 to i32
    %c0_i32_31 = arith.constant 0 : i32
    %99 = arith.cmpi ne, %98, %c0_i32_31 : i32
    scf.if %99 {
      %c0_32 = arith.constant 0 : index
      %c0_33 = arith.constant 0 : index
      %100 = vector.load %arg6[%c0_32, %c0_33] : memref<8x128xf32, #tpu.memory_space<vmem>>, vector<8x128xf32>
      %101 = arith.addf %100, %93 : vector<8x128xf32>
      %c0_34 = arith.constant 0 : index
      %c0_35 = arith.constant 0 : index
      %102 = vector.load %arg6[%c0_34, %c0_35] : memref<8x128xf32, #tpu.memory_space<vmem>>, vector<8x128xf32>
      tpu.vector_store %arg6[%c0_34, %c0_35], %101 {strides = array<i32>} : memref<8x128xf32, #tpu.memory_space<vmem>>, vector<8x128xf32>,
    } else {
    }
    return
  }
  func.func @transform_0(%arg0: i32, %arg1: i32, %arg2: memref<4xi32, #tpu.memory_space<smem>>, %arg3: memref<4xi32, #tpu.memory_space<smem>>) -> (i32, i32, i32) {
    %c0_i32 = arith.constant 0 : i32
    %c0_i32_0 = arith.constant 0 : i32
    %c0_i32_1 = arith.constant 0 : i32
    %c0_i32_2 = arith.constant 0 : i32
    return %c0_i32, %c0_i32_0, %c0_i32_1 : i32, i32, i32
  }
  func.func @transform_1(%arg0: i32, %arg1: i32, %arg2: memref<4xi32, #tpu.memory_space<smem>>, %arg3: memref<4xi32, #tpu.memory_space<smem>>) -> (i32, i32) {
    %c0_i32 = arith.constant 0 : i32
    return %arg1, %arg0 : i32, i32
  }
  func.func @transform_2(%arg0: i32, %arg1: i32, %arg2: memref<4xi32, #tpu.memory_space<smem>>, %arg3: memref<4xi32, #tpu.memory_space<smem>>) -> (i32, i32) {
    %c0_i32 = arith.constant 0 : i32
    %c0_i32_0 = arith.constant 0 : i32
    return %c0_i32, %arg0 : i32, i32
  }
}

</mosaic_0001>

<bundles_post_ra>
// kernel: tpu_custom_call.1
= control target key start
LH: loop header
LB: loop body
LE: loop exit
PB: predicated region body
PF: predicated region fallthrough
CT: control target
= control target key end

     0   :  { %s7527_s0 = inlined_call_operand.vmem [shape: s32[4], index: 0, kind: input, shape index: {}]   ;;  %s7528_s2 = inlined_call_operand.vmem [shape: s32[8,8,1], index: 2, kind: input, shape index: {}]   ;;  %s7529_s3 = inlined_call_operand.hbm [shape: f32[128,128], index: 3, kind: input, shape index: {}]   ;;  %s7530_s4 = inlined_call_operand.hbm [shape: f32[8,128], index: 4, kind: output, shape index: {}]   ;;  %s7531_s1 = inlined_call_operand.vmem [shape: s32[4], index: 1, kind: input, shape index: {}]  }
   0x1   :  { %s9_s17 = sshll.u32 %s7527_s0, 4  ;;  %s13_s20 = sshll.u32 %s7531_s1, 4  ;;  %s10_s17 = int_to_ptr.vmem [resolvable:$true] %s9_s17  ;;  %s14_s20 = int_to_ptr.vmem [resolvable:$true] %s13_s20 }
   0x2   :  { %s5324_s21 = scalar_lea.vmem %s10_s17, 16  ;;  %p5329_p1 = scmp.lt.s32.totalorder %s10_s17, %s10_s17 }
   0x3   :  { %p5325_p0 = scmp.ne.s32.totalorder %s10_s17, %s5324_s21  ;;  %p5330_p2 = scmp.lt.s32.totalorder %s5324_s21, %s5324_s21 }
   0x5   :  { %p5331_p3 = por %p5330_p2, %p5329_p1 }
   0x7   :  { %p5332_p4 = pnand %p5331_p3, %p5325_p0 }
   0x9   :  { %5335 = shalt.err (!%p5332_p4)  }
   0xa   :  { %s5398_s22 = smov [#allocation3]   ;;  %s5336_s23 = scalar_lea.vmem %s14_s20, 16 }
   0xb   :  { %12 = dma.vmem_to_smem %s10_s17, 16, %s5398_s22, [#allocation2] }
   0xc   :  { %p5337_p5 = scmp.ne.s32.totalorder %s14_s20, %s5336_s23  ;;  %p5341_p6 = scmp.lt.s32.totalorder %s14_s20, %s14_s20 }
   0xd   :  { %p5342_p7 = scmp.lt.s32.totalorder %s5336_s23, %s5336_s23 }
   0xf   :  { %p5343_p8 = por %p5342_p7, %p5341_p6 }
  0x11   :  { %p5344_p9 = pnand %p5343_p8, %p5337_p5 }
  0x13   :  { %5347 = shalt.err (!%p5344_p9)  }
  0x14   :  { %s5399_s0 = smov [#allocation4]  }
  0x15   :  { %16 = dma.vmem_to_smem %s14_s20, 16, %s5399_s0, [#allocation2] }
  0x16   :  { %5392 = dma.done.wait [#allocation2], 32 }
  0x17   :  { %5393 = vsyncadd [#allocation2], 4294967264 }
  0x18   :  { %18 = sfence }
  0x19   :  { %19 = vsyncpa [#allocation6], 0 }
  0x1a   :  { %20 = vsyncpa [#allocation7], 0  ;;  %s5400_s1 = smov [#allocation5]   ;;  %s5348_s27 = scalar_lea.hbm %s7529_s3, 2048 }
  0x1b   :  { %s28_s24 = sshll.u32 %s5400_s1, 4  ;;  %p5349_p10 = scmp.ne.s32.totalorder %s7529_s3, %s5348_s27  ;;  %s29_s24 = int_to_ptr.vmem [resolvable:$true] %s28_s24 }
  0x1c   :  { %p5352_p11 = scmp.lt.u32.totalorder %s5348_s27, %s7529_s3 }
  0x1e   :  { %p5354_p12 = pnand %p5352_p11, %p5349_p10 }
  0x20   :  { %5357 = shalt.err (!%p5354_p12)
}
  0x21   :  { %s5358_s6 = scalar_lea.vmem %s29_s24, 2048  ;;  %p5363_p0 = scmp.lt.s32.totalorder %s29_s24, %s29_s24 }
  0x22   :  { %p5359_p13 = scmp.ne.s32.totalorder %s29_s24, %s5358_s6  ;;  %p5364_p1 = scmp.lt.s32.totalorder %s5358_s6, %s5358_s6 }
  0x24   :  { %p5365_p2 = por %p5364_p1, %p5363_p0 }
  0x26   :  { %p5366_p3 = pnand %p5365_p2, %p5359_p13 }
  0x28   :  { %5369 = shalt.err (!%p5366_p3)
}
  0x29   :  { %s5401_s7 = smov 128   ;;  %s5402_s8 = smov 8  }
  0x2a   :  { %34 = dma.hbm_to_vmem [thread:$0]  %s7529_s3, 2048, %s29_s24, [#allocation6], %s5401_s7, %s5401_s7, %s5402_s8  }
  0x2b   :  { %5394 = dma.done.wait [#allocation6], 2048  }
  0x2c   :  { %5395 = vsyncadd [#allocation6], 4294965248  ;;  %v5403_v0 = vmov 0   ;;  %s52_s11 = sld [smem:[#allocation3]]  ;;  %s3415_s13 = sld [smem:[#allocation3 + $0x1]]  ;;  %v5457_v1 = vld [vmem:[%s7528_s2 + $0x10] sm:$0xff] }
  0x2d   :  { %5323 = vset.pattern.permute.xlu1 %v5403_v0  ;;  %5322 = vset.pattern.permute.xlu0 %v5403_v0  ;;  %s53_s12 = sld [smem:[#allocation4]]  ;;  %s3416_s14 = sld [smem:[#allocation4 + $0x1]]  ;;  %v5466_v4 = vld [vmem:[%s7528_s2] sm:$0xff]  ;;  %v5479_v9 = vld [vmem:[%s7528_s2 + $0x8] sm:$0xff]  ;;  %v5484_v10 = vld [vmem:[%s7528_s2 + $0x18] sm:$0xff]  ;;  %vm5406_vm0 = vmmov 0  }
  0x2e   :  { %v5499_v17 = vld [vmem:[%s7528_s2 + $0x20] sm:$0xff]  ;;  %v5516_v33 = vld [vmem:[%s7528_s2 + $0x28] sm:$0xff]  ;;  %v5524_v38 = vld [vmem:[%s7528_s2 + $0x30] sm:$0xff]  ;;  %s5404_s28 = smov 96   ;;  %s3426_s29 = sld [smem:[#allocation4 + $0x2]]  ;;  %vm200_vm11 = vcmask 1041409  }
  0x2f   :  { %v5534_v43 = vld [vmem:[%s7528_s2 + $0x38] sm:$0xff]  ;;  %v5536_v44 = vld [vmem:[#allocation5] sm:$0xff]  ;;  %v5546_v50 = vld [vmem:[#allocation5 + $0x8] sm:$0xff]  ;;  %s3425_s2 = sld [smem:[#allocation3 + $0x2]]  ;;  %s3435_s30 = sld [smem:[#allocation3 + $0x3]]  ;;  %vm202_vm15 = vcmask 1042434  }
  0x30   :  { %v216_v57 = vand.u32 4294901760, %v5536_v44  ;;  %v219_v58 = vand.u32 4294901760, %v5546_v50  ;;  %v5566_v0 = vld [vmem:[#allocation5 + $0x18] sm:$0xff]  ;;  %s3436_s5 = sld [smem:[#allocation4 + $0x3]]  ;;  %s5408_s6 = smov 64  }
  0x31   :  { %s5409_s7 = smov 32   ;;  %s5410_s8 = smov [#allocation8]  }
  0x32   :  { %v5459_v2 = vstv %s52_s11  ;;  %v5472_v7 = vstv %s3415_s13  ;;  %v5564_v63 = vpack.c.bf16 %v219_v58, %v216_v57  ;;  %s3398_s9 = sshll.u32 %s5410_s8, 4  ;;  %s3399_s9 = int_to_ptr.vmem [resolvable:$true] %s3398_s9 }
  0x33   :  { %v5461_v3 = vstv %s53_s12  ;;  %v57_v5 = vmul.u32 %v5459_v2, %v5457_v1  ;;  %v55_v6 = vmul.u32 %v5459_v2, %v5466_v4  ;;  %v5474_v8 = vstv %s3416_s14  ;;  %s5370_s10 = scalar_lea.vmem %s3399_s9, 128  ;;  %p5375_p5 = scmp.lt.s32.totalorder %s3399_s9, %s3399_s9 }
  0x34   :  { %v860_v11 = vmul.u32 %v5472_v7, %v5466_v4  ;;  %v56_v12 = vmul.u32 %v5459_v2, %v5479_v9  ;;  %7735 = vst [vmem:[#allocation12_spill] sm:$0xff] %v5564_v63  ;;  %p5371_p4 = scmp.ne.s32.totalorder %s3399_s9, %s5370_s10  ;;  %p5376_p6 = scmp.lt.s32.totalorder %s5370_s10, %s5370_s10 }
  0x35   :  { %v66_v13 = vadd.s32 %v5461_v3, %v57_v5  ;;  %v64_v14 = vadd.s32 %v5461_v3, %v55_v6  ;;  %v58_v15 = vmul.u32 %v5459_v2, %v5484_v10  ;;  %v861_v16 = vmul.u32 %v5472_v7, %v5479_v9 }
  0x36   :  { %v869_v18 = vadd.s32 %v5474_v8, %v860_v11  ;;  %v65_v19 = vadd.s32 %v5461_v3, %v56_v12  ;;  %v59_v22 = vmul.u32 %v5459_v2, %v5499_v17  ;;  %v862_v23 = vmul.u32 %v5472_v7, %v5457_v1  ;;  %v5582_v12 = vld [vmem:[#allocation5 + $0x28] sm:$0xff]  ;;  %p5377_p7 = por %p5376_p6, %p5375_p5 }
  0x37   :  { %v74_v20 = vand.u32 127, %v66_v13  ;;  %v72_v21 = vand.u32 127, %v64_v14  ;;  %v67_v26 = vadd.s32 %v5461_v3, %v58_v15  ;;  %v870_v27 = vadd.s32 %v5474_v8, %v861_v16  ;;  %v5584_v13 = vld [vmem:[#allocation5 + $0x20] sm:$0xff] }
  0x38   :  { %v877_v24 = vand.u32 127, %v869_v18  ;;  %v73_v25 = vand.u32 127, %v65_v19  ;;  %v68_v28 = vadd.s32 %v5461_v3, %v59_v22  ;;  %v871_v31 = vadd.s32 %v5474_v8, %v862_v23  ;;  %v5596_v18 = vld [vmem:[#allocation5 + $0x30] sm:$0xff]  ;;  %v5598_v19 = vld [vmem:[#allocation5 + $0x38] sm:$0xff]  ;;  %v5608_v22 = vld [vmem:[#allocation5 + $0x48] sm:$0xff]  ;;  %p5378_p8 = pnand %p5377_p7, %p5371_p4 }
  0x39   :  { %87 = vperm.xlu1 %5323, %v74_v20   ;;  %81 = vperm.xlu0 %5322, %v72_v21   ;;  %v75_v29 = vand.u32 127, %v67_v26  ;;  %v878_v30 = vand.u32 127, %v870_v27  ;;  %v863_v32 = vmul.u32 %v5472_v7, %v5484_v10  ;;  %v60_v37 = vmul.u32 %v5459_v2, %v5516_v33  ;;  %v5610_v23 = vld [vmem:[#allocation5 + $0x40] sm:$0xff] }
  0x3a   :  { %v76_v34 = vand.u32 127, %v68_v28  ;;  %v879_v35 = vand.u32 127, %v871_v31  ;;  %v61_v41 = vmul.u32 %v5459_v2, %v5524_v38  ;;  %v864_v42 = vmul.u32 %v5472_v7, %v5499_v17  ;;  %v5631_v28 = vld [vmem:[#allocation5 + $0x58] sm:$0xff] }
  0x3b   :  { %v872_v36 = vadd.s32 %v5474_v8, %v863_v32  ;;  %v69_v40 = vadd.s32 %v5461_v3, %v60_v37  ;;  %v62_v45 = vmul.u32 %v5459_v2, %v5534_v43  ;;  %v865_v49 = vmul.u32 %v5472_v7, %v5516_v33  ;;  %v5568_v2 = vld [vmem:[#allocation5 + $0x10] sm:$0xff] }
  0x3c   :  { %v70_v47 = vadd.s32 %v5461_v3, %v61_v41  ;;  %v873_v48 = vadd.s32 %v5474_v8, %v864_v42  ;;  %v867_v51 = vmul.u32 %v5472_v7, %v5534_v43  ;;  %v866_v52 = vmul.u32 %v5472_v7, %v5524_v38  ;;  %v5669_v41 = vld [vmem:[#allocation5 + $0x78] sm:$0xff]  ;;  %v5671_v42 = vld [vmem:[#allocation5 + $0x70] sm:$0xff] }
  0x3d   :  { %886 = vperm.xlu1 %5323, %v877_v24   ;;  %84 = vperm.xlu0 %5322, %v73_v25   ;;  %v880_v39 = vand.u32 127, %v872_v36  ;;  %v77_v46 = vand.u32 127, %v69_v40  ;;  %v71_v55 = vadd.s32 %v5461_v3, %v62_v45  ;;  %v874_v56 = vadd.s32 %v5474_v8, %v865_v49 }
  0x3e   :  { %v78_v53 = vand.u32 127, %v70_v47  ;;  %v881_v54 = vand.u32 127, %v873_v48  ;;  %v876_v59 = vadd.s32 %v5474_v8, %v867_v51  ;;  %v875_v60 = vadd.s32 %v5474_v8, %v866_v52 }
  0x3f   :  { %v79_v61 = vand.u32 127, %v71_v55  ;;  %v882_v62 = vand.u32 127, %v874_v56  ;;  %v7532_v3 = vmov 0.0|0.0   ;;  %v222_v5 = vand.u32 4294901760, %v5568_v2 }
  0x40   :  { %4693 = vmatprep.subr.bf16.mxu0 %v7532_v3  ;;  %4837 = vmatprep.subr.bf16.mxu1 %v7532_v3  ;;  %v225_v6 = vand.u32 4294901760, %v5566_v0  ;;  %v884_v7 = vand.u32 127, %v876_v59  ;;  %v883_v8 = vand.u32 127, %v875_v60  ;;  %v228_v14 = vand.u32 4294901760, %v5584_v13 }
  0x41   :  { %90 = vperm.xlu1 %5323, %v75_v29   ;;  %889 = vperm.xlu0 %5322, %v878_v30   ;;  %v231_v15 = vand.u32 4294901760, %v5582_v12  ;;  %v234_v20 = vand.u32 4294901760, %v5596_v18  ;;  %v237_v21 = vand.u32 4294901760, %v5598_v19  ;;  %v240_v25 = vand.u32 4294901760, %v5610_v23  ;;  %v5633_v29 = vld [vmem:[#allocation5 + $0x50] sm:$0xff] }
  0x42   :  { %4695 = vmatpush3.bf16.msra.mxu0 %v5564_v63  ;;  %v5580_v11 = vpack.c.bf16 %v225_v6, %v222_v5  ;;  %v243_v26 = vand.u32 4294901760, %v5608_v22  ;;  %v246_v30 = vand.u32 4294901760, %v5633_v29  ;;  %v7544_v31 = vand.u32 4294901760, %v5631_v28 }
  0x43   :  { %4696 = vmatprep.subr.bf16.mxu0 %v7532_v3  ;;  %v5594_v16 = vpack.c.bf16 %v231_v15, %v228_v14  ;;  %v5616_v24 = vpack.c.bf16 %v237_v21, %v234_v20  ;;  %v7537_v45 = vand.u32 4294901760, %v5671_v42  ;;  %v5683_v48 = vstv %s3426_s29 }
  0x44   :  { %7736 = vst [vmem:[#allocation13_spill] sm:$0xff] %v5580_v11  ;;  %v5629_v27 = vpack.c.bf16 %v243_v26, %v240_v25  ;;  %v5647_v32 = vpack.c.bf16 %v7544_v31, %v246_v30  ;;  %v5693_v52 = vstv %s3435_s30  ;;  %v5717_v59 = vstv %s3436_s5 }
  0x45   :  { %93 = vperm.xlu1 %5323, %v76_v34   ;;  %892 = vperm.xlu0 %5322, %v879_v35   ;;  %7737 = vst [vmem:[#allocation14_spill] sm:$0xff] %v5594_v16  ;;  %7738 = vst [vmem:[#allocation15_spill] sm:$0xff] %v5616_v24  ;;  %v5649_v34 = vld [vmem:[#allocation5 + $0x68] sm:$0xff]  ;;  %v5651_v35 = vld [vmem:[#allocation5 + $0x60] sm:$0xff]  ;;  %v7534_v60 = vmov 0.0  }
  0x46   :  { %4698 = vmatpush3.bf16.msra.mxu0 %v5580_v11  ;;  %7739 = vst [vmem:[#allocation16_spill] sm:$0xff] %v5629_v27  ;;  %7740 = vst [vmem:[#allocation17_spill] sm:$0xff] %v5647_v32  ;;  %v7543_v36 = vand.u32 4294901760, %v5651_v35  ;;  %v7540_v37 = vand.u32 4294901760, %v5649_v34  ;;  %3885 = vmatprep.mubr.msk.f32.mxu0 %vm5406_vm0, %v7534_v60 }
  0x47   :  { %4699 = vmatprep.subr.bf16.mxu0 %v7532_v3  ;;  %4095 = vmatprep.mubr.msk.f32.mxu1 %vm5406_vm0, %v7534_v60 }
  0x48   :  { %v5667_v40 = vpack.c.bf16 %v7540_v37, %v7543_v36 }
  0x49   :  { %1013 = vrot.lane.b32.xlu1 %v5536_v44, %s5404_s28  ;;  %895 = vperm.xlu0 %5322, %v880_v39   ;;  %v5661_v39 = vstv %s3425_s2 }
  0x4a   :  { %4701 = vmatpush3.bf16.msra.mxu0 %v5594_v16  ;;  %7741 = vst [vmem:[#allocation18_spill] sm:$0xff] %v5667_v40  ;;  %v1707_v47 = vmul.u32 %v5661_v39, %v5479_v9  ;;  %v1706_v49 = vmul.u32 %v5661_v39, %v5466_v4 }
  0x4b   :  { %4702 = vmatprep.subr.bf16.mxu0 %v7532_v3 }
  0x4c   :  { %v1716_v55 = vadd.s32 %v5683_v48, %v1707_v47  ;;  %v1715_v56 = vadd.s32 %v5683_v48, %v1706_v49  ;;  %v2537_v47 = vmul.u32 %v5693_v52, %v5479_v9 }
  0x4d   :  { %96 = vperm.xlu1 %5323, %v77_v46   ;;  %1015 = vrot.lane.b32.xlu0 %v5546_v50, %s5404_s28  ;;  %v7536_v46 = vand.u32 4294901760, %v5669_v41 }
  0x4e   :  { %4704 = vmatpush3.bf16.msra.mxu0 %v5616_v24 }
  0x4f   :  { %4705 = vmatprep.subr.bf16.mxu0 %v7532_v3  ;;  %v5691_v51 = vpack.c.bf16 %v7536_v46, %v7537_v45 }
  0x51   :  { %99 = vperm.xlu1 %5323, %v78_v53   ;;  %898 = vperm.xlu0 %5322, %v881_v54   ;;  %7742 = vst [vmem:[#allocation19_spill] sm:$0xff] %v5691_v51  ;;  %v5698_v53 = vsub.f32 %v5536_v44, %v216_v57  ;;  %v5703_v54 = vsub.f32 %v5546_v50, %v219_v58 }
  0x52   :  { %4707 = vmatpush3.bf16.msra.mxu0 %v5629_v27  ;;  %v2536_v57 = vmul.u32 %v5693_v52, %v5466_v4  ;;  %v1708_v58 = vmul.u32 %v5661_v39, %v5457_v1  ;;  %v5727_v4 = vsub.f32 %v5568_v2, %v222_v5 }
  0x53   :  { %4708 = vmatprep.subr.bf16.mxu0 %v7532_v3 }
  0x54   :  { %v2545_v60 = vadd.s32 %v5717_v59, %v2536_v57  ;;  %v1717_v9 = vadd.s32 %v5683_v48, %v1708_v58  ;;  %v7542_v37 = vand.u32 4294901760, %v5727_v4  ;;  %v2546_v57 = vadd.s32 %v5717_v59, %v2537_v47 }
  0x55   :  { %102 = vperm.xlu1 %5323, %v79_v61   ;;  %901 = vperm.xlu0 %5322, %v882_v62   ;;  %v7538_v61 = vand.u32 4294901760, %v5698_v53  ;;  %v7539_v62 = vand.u32 4294901760, %v5703_v54 }
  0x56   :  { %4710 = vmatpush3.bf16.msra.mxu0 %v5647_v32 }
  0x57   :  { %4711 = vmatprep.subr.bf16.mxu0 %v7532_v3  ;;  %v310_v49 = vsub.f32 %v5698_v53, %v7538_v61  ;;  %v317_v5 = vsub.f32 %v5703_v54, %v7539_v62  ;;  %v5755_v61 = vsub.f32 %v5584_v13, %v228_v14  ;;  %v5760_v62 = vsub.f32 %v5582_v12, %v231_v15 }
  0x58   :  { %v1725_v14 = vand.u32 127, %v1717_v9  ;;  %v1710_v9 = vmul.u32 %v5661_v39, %v5499_v17 }
  0x59   :  { %907 = vperm.xlu1 %5323, %v884_v7   ;;  %904 = vperm.xlu0 %5322, %v883_v8   ;;  %v5732_v7 = vsub.f32 %v5566_v0, %v225_v6  ;;  %v1709_v8 = vmul.u32 %v5661_v39, %v5484_v10  ;;  %v1724_v6 = vand.u32 127, %v1716_v55  ;;  %v311_v46 = vand.u32 4294901760, %v310_v49 }
  0x5a   :  { %4713 = vmatpush3.bf16.msra.mxu0 %v5667_v40  ;;  %v318_v45 = vand.u32 4294901760, %v317_v5  ;;  %v2553_v49 = vand.u32 127, %v2545_v60  ;;  %v324_v5 = vsub.f32 %v5727_v4, %v7542_v37  ;;  %v7550_v60 = vand.u32 4294901760, %v5755_v61 }
  0x5b   :  { %4714 = vmatprep.subr.bf16.mxu0 %v7532_v3  ;;  %v7541_v55 = vand.u32 4294901760, %v5732_v7  ;;  %v7548_v47 = vand.u32 4294901760, %v5760_v62 }
  0x5c   :  { %v5766_v58 = vpack.c.bf16 %v318_v45, %v311_v46  ;;  %v5782_v45 = vsub.f32 %v5598_v19, %v237_v21  ;;  %v338_v21 = vsub.f32 %v5755_v61, %v7550_v60 }
  0x5d   :  { %1019 = vrot.lane.b32.xlu1 %v5566_v0, %s5404_s28  ;;  %1017 = vrot.lane.b32.xlu0 %v5568_v2, %s5404_s28  ;;  %v331_v15 = vsub.f32 %v5732_v7, %v7541_v55  ;;  %v2538_v55 = vmul.u32 %v5693_v52, %v5457_v1  ;;  %v1719_v1 = vadd.s32 %v5683_v48, %v1710_v9 }
  0x5e   :  { %4716 = vmatpush3.bf16.msra.mxu0 %v5691_v51  ;;  %v7545_v31 = vand.u32 4294901760, %v5782_v45 }
  0x5f   :  { %4717 = vmatprep.subr.bf16.mxu0 %v7532_v3  ;;  %v1723_v3 = vand.u32 127, %v1715_v56  ;;  %v1718_v56 = vadd.s32 %v5683_v48, %v1709_v8  ;;  %v5777_v8 = vsub.f32 %v5596_v18, %v234_v20  ;;  %v332_v46 = vand.u32 4294901760, %v331_v15 }
  0x60   :  { %v2554_v20 = vand.u32 127, %v2546_v57  ;;  %v2547_v57 = vadd.s32 %v5717_v59, %v2538_v55  ;;  %v1711_v55 = vmul.u32 %v5661_v39, %v5516_v33 }
  0x61   :  { %1023 = vrot.lane.b32.xlu1 %v5582_v12, %s5404_s28  ;;  %1021 = vrot.lane.b32.xlu0 %v5584_v13, %s5404_s28  ;;  %7743 = vst [vmem:[#allocation20_spill] sm:$0xff] %v5777_v8  ;;  %v7546_v36 = vand.u32 4294901760, %v5777_v8 }
  0x65   :  { %1027 = vrot.lane.b32.xlu1 %v5598_v19, %s5404_s28  ;;  %1025 = vrot.lane.b32.xlu0 %v5596_v18, %s5404_s28 }
  0x69   :  { %1031 = vrot.lane.b32.xlu1 %v5608_v22, %s5404_s28  ;;  %1029 = vrot.lane.b32.xlu0 %v5610_v23, %s5404_s28 }
  0x6d   :  { %1035 = vrot.lane.b32.xlu1 %v5631_v28, %s5404_s28  ;;  %1033 = vrot.lane.b32.xlu0 %v5633_v29, %s5404_s28 }
  0x71   :  { %1039 = vrot.lane.b32.xlu1 %v5649_v34, %s5404_s28  ;;  %1037 = vrot.lane.b32.xlu0 %v5651_v35, %s5404_s28 }
  0x75   :  { %1043 = vrot.lane.b32.xlu1 %v5669_v41, %s5404_s28  ;;  %1041 = vrot.lane.b32.xlu0 %v5671_v42, %s5404_s28 }
  0x79   :  { %1735 = vperm.xlu1 %5323, %v1724_v6   ;;  %1732 = vperm.xlu0 %5322, %v1723_v3   ;;  %v325_v3 = vand.u32 4294901760, %v324_v5  ;;  %v1726_v6 = vand.u32 127, %v1718_v56  ;;  %v345_v5 = vsub.f32 %v5760_v62, %v7548_v47  ;;  %v339_v56 = vand.u32 4294901760, %v338_v21 }
  0x7b   :  { %v5790_v37 = vpack.c.bf16 %v332_v46, %v325_v3  ;;  %v346_v15 = vand.u32 4294901760, %v345_v5  ;;  %v352_v3 = vsub.f32 %v5777_v8, %v7546_v36  ;;  %v359_v46 = vsub.f32 %v5782_v45, %v7545_v31 }
  0x7d   :  { %2562 = vperm.xlu1 %5323, %v2553_v49   ;;  %1738 = vperm.xlu0 %5322, %v1725_v14   ;;  %v2539_v49 = vmul.u32 %v5693_v52, %v5484_v10  ;;  %v5804_v14 = vpack.c.bf16 %v346_v15, %v339_v56  ;;  %v353_v21 = vand.u32 4294901760, %v352_v3  ;;  %v360_v5 = vand.u32 4294901760, %v359_v46 }
  0x7e   :  { %v1727_v10 = vand.u32 127, %v1719_v1  ;;  %v1712_v56 = vmul.u32 %v5661_v39, %v5524_v38  ;;  %v5826_v15 = vsub.f32 %v5610_v23, %v240_v25  ;;  %v5831_v3 = vsub.f32 %v5608_v22, %v243_v26 }
  0x7f   :  { %v2548_v9 = vadd.s32 %v5717_v59, %v2539_v49  ;;  %v2540_v49 = vmul.u32 %v5693_v52, %v5499_v17  ;;  %v2541_v25 = vmul.u32 %v5693_v52, %v5516_v33  ;;  %v5844_v26 = vsub.f32 %v5633_v29, %v246_v30 }
  0x80   :  { %7744 = vst [vmem:[#allocation21_spill] sm:$0xff] %v5826_v15  ;;  %7745 = vst [vmem:[#allocation22_spill] sm:$0xff] %v5831_v3  ;;  %v1721_v46 = vadd.s32 %v5683_v48, %v1712_v56  ;;  %v7547_v17 = vand.u32 4294901760, %v5826_v15  ;;  %v7749_v30 = vand.u32 4294901760, %v5651_v35 }
  0x81   :  { %1741 = vperm.xlu1 %5323, %v1726_v6   ;;  %2565 = vperm.xlu0 %5322, %v2554_v20   ;;  %v2555_v6 = vand.u32 127, %v2547_v57  ;;  %v5819_v20 = vpack.c.bf16 %v360_v5, %v353_v21  ;;  %v2556_v1 = vand.u32 127, %v2548_v9  ;;  %v1720_v57 = vadd.s32 %v5683_v48, %v1711_v55  ;;  %7746 = vst [vmem:[#allocation23_spill] sm:$0xff] %v5844_v26 }
  0x82   :  { %v1713_v21 = vmul.u32 %v5661_v39, %v5534_v43  ;;  %v7747_v5 = vand.u32 4294901760, %v5631_v28  ;;  %v2549_v39 = vadd.s32 %v5717_v59, %v2540_v49  ;;  %v7751_v9 = vand.u32 4294901760, %v5649_v34 }
  0x83   :  { %v1728_v33 = vand.u32 127, %v1720_v57  ;;  %v2550_v57 = vadd.s32 %v5717_v59, %v2541_v25  ;;  %v7553_v31 = vand.u32 4294901760, %v5844_v26  ;;  %v2543_v25 = vmul.u32 %v5693_v52, %v5534_v43 }
  0x84   :  { %v5849_v55 = vsub.f32 %v5631_v28, %v7747_v5  ;;  %v5864_v56 = vsub.f32 %v5649_v34, %v7751_v9  ;;  %v366_v5 = vsub.f32 %v5826_v15, %v7547_v17  ;;  %v1729_v9 = vand.u32 127, %v1721_v46 }
  0x85   :  { %1845 = vrot.lane.b32.xlu1 %v5546_v50, %s5408_s6  ;;  %1843 = vrot.lane.b32.xlu0 %v5536_v44, %s5408_s6  ;;  %v2557_v17 = vand.u32 127, %v2549_v39 }
  0x86   :  { %7748 = vst [vmem:[#allocation24_spill] sm:$0xff] %v5849_v55  ;;  %7752 = vst [vmem:[#allocation26_spill] sm:$0xff] %v5864_v56  ;;  %v367_v49 = vand.u32 4294901760, %v366_v5  ;;  %v7551_v36 = vand.u32 4294901760, %v5849_v55 }
  0x89   :  { %1744 = vperm.xlu1 %5323, %v1727_v10   ;;  %2568 = vperm.xlu0 %5322, %v2555_v6   ;;  %v7549_v10 = vand.u32 4294901760, %v5831_v3  ;;  %v5859_v6 = vsub.f32 %v5651_v35, %v7749_v30 }
  0x8b   :  { %7750 = vst [vmem:[#allocation25_spill] sm:$0xff] %v5859_v6  ;;  %v7552_v47 = vand.u32 4294901760, %v5859_v6 }
  0x8d   :  { %2673 = vrot.lane.b32.xlu1 %v5536_v44, %s5409_s7  ;;  %2571 = vperm.xlu0 %5322, %v2556_v1   ;;  %v373_v44 = vsub.f32 %v5831_v3, %v7549_v10  ;;  %v1722_v1 = vadd.s32 %v5683_v48, %v1713_v21  ;;  %v7554_v10 = vand.u32 4294901760, %v5864_v56  ;;  %v380_v48 = vsub.f32 %v5844_v26, %v7553_v31 }
  0x8e   :  { %v387_v21 = vsub.f32 %v5849_v55, %v7551_v36 }
  0x8f   :  { %v374_v30 = vand.u32 4294901760, %v373_v44  ;;  %v401_v46 = vsub.f32 %v5864_v56, %v7554_v10  ;;  %v381_v39 = vand.u32 4294901760, %v380_v48  ;;  %v1730_v44 = vand.u32 127, %v1722_v1 }
  0x90   :  { %v388_v5 = vand.u32 4294901760, %v387_v21  ;;  %v7755_v10 = vand.u32 4294901760, %v5669_v41 }
  0x91   :  { %1747 = vperm.xlu1 %5323, %v1728_v33   ;;  %2675 = vrot.lane.b32.xlu0 %v5546_v50, %s5409_s7  ;;  %v5880_v60 = vpack.c.bf16 %v374_v30, %v367_v49  ;;  %v394_v50 = vsub.f32 %v5859_v6, %v7552_v47  ;;  %v2542_v33 = vmul.u32 %v5693_v52, %v5524_v38  ;;  %v2558_v49 = vand.u32 127, %v2550_v57 }
  0x92   :  { %v402_v36 = vand.u32 4294901760, %v401_v46  ;;  %v7753_v47 = vand.u32 4294901760, %v5671_v42  ;;  %v5906_v43 = vsub.f32 %v5669_v41, %v7755_v10  ;;  %v5908_v51 = vpack.c.bf16 %v388_v5, %v381_v39 }
  0x93   :  { %v395_v30 = vand.u32 4294901760, %v394_v50  ;;  %v2552_v52 = vadd.s32 %v5717_v59, %v2543_v25 }
  0x94   :  { %v5901_v31 = vsub.f32 %v5671_v42, %v7753_v47  ;;  %7756 = vst [vmem:[#allocation28_spill] sm:$0xff] %v5906_v43  ;;  %v7557_v47 = vand.u32 4294901760, %v5906_v43 }
  0x95   :  { %1750 = vperm.xlu1 %5323, %v1729_v9   ;;  %2574 = vperm.xlu0 %5322, %v2557_v17   ;;  %v5910_v38 = vpack.c.bf16 %v402_v36, %v395_v30  ;;  %v2551_v17 = vadd.s32 %v5717_v59, %v2542_v33  ;;  %v2560_v59 = vand.u32 127, %v2552_v52 }
  0x96   :  { %7754 = vst [vmem:[#allocation27_spill] sm:$0xff] %v5901_v31  ;;  %v7558_v1 = vand.u32 4294901760, %v5901_v31  ;;  %v415_v10 = vsub.f32 %v5906_v43, %v7557_v47 }
  0x97   :  { %v2559_v9 = vand.u32 127, %v2551_v17 }
  0x98   :  { %v408_v57 = vsub.f32 %v5901_v31, %v7558_v1  ;;  %v416_v21 = vand.u32 4294901760, %v415_v10 }
  0x99   :  { %1753 = vperm.xlu1 %5323, %v1730_v44   ;;  %2577 = vperm.xlu0 %5322, %v2558_v49  }
  0x9a   :  { %v409_v48 = vand.u32 4294901760, %v408_v57 }
  0x9c   :  { %v5930_v46 = vpack.c.bf16 %v416_v21, %v409_v48 }
  0x9d   :  { %1849 = vrot.lane.b32.xlu1 %v5566_v0, %s5408_s6  ;;  %1847 = vrot.lane.b32.xlu0 %v5568_v2, %s5408_s6 }
  0xa1   :  { %2583 = vperm.xlu1 %5323, %v2560_v59   ;;  %2580 = vperm.xlu0 %5322, %v2559_v9  }
  0xa5   :  { %2679 = vrot.lane.b32.xlu1 %v5566_v0, %s5409_s7  ;;  %2677 = vrot.lane.b32.xlu0 %v5568_v2, %s5409_s7  ;;  %v46_v0 = vlaneseq }
  0xa7   :  { %v5954_v2 = vand.u32 127, %v46_v0 }
  0xa9   :  { %1853 = vrot.lane.b32.xlu1 %v5582_v12, %s5408_s6  ;;  %1851 = vrot.lane.b32.xlu0 %v5584_v13, %s5408_s6  ;;  %7757 = vst [vmem:[#allocation29_spill] sm:$0xff] %v5954_v2 }
  0xad   :  { %2683 = vrot.lane.b32.xlu1 %v5582_v12, %s5409_s7  ;;  %2681 = vrot.lane.b32.xlu0 %v5584_v13, %s5409_s7 }
  0xb1   :  { %1857 = vrot.lane.b32.xlu1 %v5598_v19, %s5408_s6  ;;  %1855 = vrot.lane.b32.xlu0 %v5596_v18, %s5408_s6 }
  0xb5   :  { %2687 = vrot.lane.b32.xlu1 %v5598_v19, %s5409_s7  ;;  %2685 = vrot.lane.b32.xlu0 %v5596_v18, %s5409_s7  ;;  %v7758_v18 = vmov 0.0  }
  0xb8   :  { %v88_v44 = vpop.permute.xlu1 %87  ;;  %v82_v49 = vpop.permute.xlu0 %81 }
  0xb9   :  { %vm106_vm1 = vcmp.eq.s32.totalorder %v88_v44, %v5954_v2  ;;  %vm104_vm2 = vcmp.eq.s32.totalorder %v82_v49, %v5954_v2  ;;  %1861 = vrot.lane.b32.xlu1 %v5608_v22, %s5408_s6  ;;  %1859 = vrot.lane.b32.xlu0 %v5610_v23, %s5408_s6 }
  0xba   :  { %v3409_v19 = vsel %vm106_vm1, 1.0, %v7758_v18  ;;  %v3407_v30 = vsel %vm104_vm2, 1.0, %v7758_v18 }
  0xbb   :  { %v140_v57 = vrot.slane %v3409_v19, 4  ;;  %v128_v10 = vrot.slane %v3407_v30, 4 }
  0xbc   :  { %v887_v52 = vpop.permute.xlu1 %886  ;;  %v85_v17 = vpop.permute.xlu0 %84 }
  0xbd   :  { %2691 = vrot.lane.b32.xlu1 %v5608_v22, %s5409_s7  ;;  %vm105_vm3 = vcmp.eq.s32.totalorder %v85_v17, %v5954_v2  ;;  %2689 = vrot.lane.b32.xlu0 %v5610_v23, %s5409_s7  ;;  %v141_v21 = vadd.f32 %v3409_v19, %v140_v57  ;;  %v129_v0 = vadd.f32 %v3407_v30, %v128_v10 }
  0xbe   :  { %v3408_v48 = vsel %vm105_vm3, 1.0, %v7758_v18  ;;  %vm909_vm4 = vcmp.eq.s32.totalorder %v887_v52, %v5954_v2 }
  0xbf   :  { %v134_v22 = vrot.slane %v3408_v48, 4  ;;  %v3417_v23 = vsel %vm909_vm4, 1.0, %v7758_v18  ;;  %v142_v17 = vrot.slane %v141_v21, 2  ;;  %v130_v47 = vrot.slane %v129_v0, 2 }
  0xc0   :  { %v91_v59 = vpop.permute.xlu1 %90  ;;  %v890_v9 = vpop.permute.xlu0 %889  ;;  %v933_v57 = vrot.slane %v3417_v23, 4  ;;  %vm204_vm4 = vcmask 1043459  }
  0xc1   :  { %1865 = vrot.lane.b32.xlu1 %v5631_v28, %s5408_s6  ;;  %1863 = vrot.lane.b32.xlu0 %v5633_v29, %s5408_s6  ;;  %vm107_vm5 = vcmp.eq.s32.totalorder %v91_v59, %v5954_v2  ;;  %v135_v1 = vadd.f32 %v3408_v48, %v134_v22  ;;  %vm910_vm6 = vcmp.eq.s32.totalorder %v890_v9, %v5954_v2 }
  0xc2   :  { %v3410_v52 = vsel %vm107_vm5, 1.0, %v7758_v18  ;;  %v934_v22 = vadd.f32 %v3417_v23, %v933_v57  ;;  %v3418_v13 = vsel %vm910_vm6, 1.0, %v7758_v18  ;;  %vm206_vm5 = vcmask 1044484  }
  0xc3   :  { %v136_v10 = vrot.slane %v135_v1, 2  ;;  %v146_v5 = vrot.slane %v3410_v52, 4  ;;  %v939_v23 = vrot.slane %v3418_v13, 4  ;;  %vm208_vm6 = vcmask 1045509  }
  0xc4   :  { %v94_v44 = vpop.permute.xlu1 %93  ;;  %v893_v49 = vpop.permute.xlu0 %892  ;;  %v935_v39 = vrot.slane %v934_v22, 2 }
  0xc5   :  { %2695 = vrot.lane.b32.xlu1 %v5631_v28, %s5409_s7  ;;  %2693 = vrot.lane.b32.xlu0 %v5633_v29, %s5409_s7  ;;  %v143_v28 = vadd.f32 %v142_v17, %v141_v21  ;;  %v131_v29 = vadd.f32 %v130_v47, %v129_v0  ;;  %vm108_vm7 = vcmp.eq.s32.totalorder %v94_v44, %v5954_v2 }
  0xc6   :  { %v3411_v0 = vsel %vm108_vm7, 1.0, %v7758_v18  ;;  %vm911_vm9 = vcmp.eq.s32.totalorder %v893_v49, %v5954_v2  ;;  %v137_v44 = vadd.f32 %v136_v10, %v135_v1  ;;  %v147_v33 = vadd.f32 %v3410_v52, %v146_v5 }
  0xc7   :  { %v144_v21 = vrot.slane %v143_v28, 1  ;;  %v132_v47 = vrot.slane %v131_v29, 1  ;;  %v940_v50 = vadd.f32 %v3418_v13, %v939_v23  ;;  %vm210_vm7 = vcmask 1046534  }
  0xc8   :  { %v1014_v19 = vpop.permute.xlu1 %1013  ;;  %v896_v30 = vpop.permute.xlu0 %895  ;;  %v148_v40 = vrot.slane %v147_v33, 2 }
  0xc9   :  { %1869 = vrot.lane.b32.xlu1 %v5649_v34, %s5408_s6  ;;  %1867 = vrot.lane.b32.xlu0 %v5651_v35, %s5408_s6  ;;  %v1062_v9 = vand.u32 4294901760, %v1014_v19  ;;  %vm912_vm10 = vcmp.eq.s32.totalorder %v896_v30, %v5954_v2  ;;  %v6017_v49 = vadd.f32 %v144_v21, %v143_v28  ;;  %v133_v10 = vadd.f32 %v132_v47, %v131_v29 }
  0xca   :  { %v138_v30 = vrot.slane %v137_v44, 1  ;;  %v3420_v36 = vsel %vm912_vm10, 1.0, %v7758_v18  ;;  %v7760_v28 = vmov 0.0|0.0  }
  0xcb   :  { %v6011_v25 = vsub.f32 %v1014_v19, %v1062_v9  ;;  %v951_v21 = vrot.slane %v3420_v36, 4 }
  0xcc   :  { %v97_v59 = vpop.permute.xlu1 %96  ;;  %v1016_v48 = vpop.permute.xlu0 %1015 }
  0xcd   :  { %vm109_vm8 = vcmp.eq.s32.totalorder %v97_v59, %v5954_v2  ;;  %2699 = vrot.lane.b32.xlu1 %v5649_v34, %s5409_s7  ;;  %2697 = vrot.lane.b32.xlu0 %v5651_v35, %s5409_s7  ;;  %v1065_v57 = vand.u32 4294901760, %v1016_v48  ;;  %v152_v34 = vrot.slane %v3411_v0, 4  ;;  %v3419_v35 = vsel %vm911_vm9, 1.0, %v7758_v18 }
  0xce   :  { %v3412_v17 = vsel %vm109_vm8, 1.0, %v7758_v18  ;;  %v945_v32 = vrot.slane %v3419_v35, 4  ;;  %v7580_v29 = vand.u32 4294901760, %v6011_v25  ;;  %v952_v16 = vadd.f32 %v3420_v36, %v951_v21 }
  0xcf   :  { %v6013_v1 = vpack.c.bf16 %v1065_v57, %v1062_v9  ;;  %v158_v5 = vrot.slane %v3412_v17, 4  ;;  %v6019_v52 = vsub.f32 %v1016_v48, %v1065_v57  ;;  %v153_v13 = vadd.f32 %v3411_v0, %v152_v34 }
  0xd0   :  { %v100_v12 = vpop.permute.xlu1 %99  ;;  %v899_v59 = vpop.permute.xlu0 %898  ;;  %v6034_v48 = vadd.f32 %v935_v39, %v934_v22  ;;  %v941_v39 = vrot.slane %v940_v50, 2  ;;  %v946_v22 = vadd.f32 %v3419_v35, %v945_v32  ;;  %vm212_vm8 = vcmask 1047559  }
  0xd1   :  { %1873 = vrot.lane.b32.xlu1 %v5669_v41, %s5408_s6  ;;  %7759 = vst [vmem:[#allocation30_spill] sm:$0xff] %v6013_v1  ;;  %1871 = vrot.lane.b32.xlu0 %v5671_v42, %s5408_s6  ;;  %vm110_vm12 = vcmp.eq.s32.totalorder %v100_v12, %v5954_v2  ;;  %v7579_v27 = vand.u32 4294901760, %v6019_v52  ;;  %vm913_vm13 = vcmp.eq.s32.totalorder %v899_v59, %v5954_v2 }
  0xd2   :  { %4839 = vmatpush3.bf16.msra.mxu1 %v6013_v1  ;;  %v3413_v12 = vsel %vm110_vm12, 1.0, %v7758_v18  ;;  %v159_v47 = vadd.f32 %v3412_v17, %v158_v5  ;;  %v3421_v57 = vsel %vm913_vm13, 1.0, %v7758_v18  ;;  %v149_v5 = vadd.f32 %v148_v40, %v147_v33 }
  0xd3   :  { %4840 = vmatprep.subr.bf16.mxu1 %v7760_v28  ;;  %v164_v23 = vrot.slane %v3413_v12, 4  ;;  %v6043_v34 = vpack.c.bf16 %v7579_v27, %v7580_v29  ;;  %v947_v40 = vrot.slane %v946_v22, 2  ;;  %v942_v21 = vadd.f32 %v941_v39, %v940_v50 }
  0xd4   :  { %v103_v19 = vpop.permute.xlu1 %102  ;;  %v902_v9 = vpop.permute.xlu0 %901  ;;  %v160_v11 = vrot.slane %v159_v47, 2  ;;  %v953_v29 = vrot.slane %v952_v16, 2 }
  0xd5   :  { %2703 = vrot.lane.b32.xlu1 %v5669_v41, %s5409_s7  ;;  %vm111_vm14 = vcmp.eq.s32.totalorder %v103_v19, %v5954_v2  ;;  %2701 = vrot.lane.b32.xlu0 %v5671_v42, %s5409_s7  ;;  %vm914_vm1 = vcmp.eq.s32.totalorder %v902_v9, %v5954_v2  ;;  %7761 = vst [vmem:[#allocation31_spill] sm:$0xff] %v6043_v34  ;;  %v154_v19 = vrot.slane %v153_v13, 2  ;;  %v957_v9 = vrot.slane %v3421_v57, 4 }
  0xd6   :  { %v3414_v41 = vsel %vm111_vm14, 1.0, %v7758_v18  ;;  %v139_v42 = vadd.f32 %v138_v30, %v137_v44  ;;  %v165_v17 = vadd.f32 %v3413_v12, %v164_v23  ;;  %v3422_v24 = vsel %vm914_vm1, 1.0, %v7758_v18 }
  0xd7   :  { %v170_v1 = vrot.slane %v3414_v41, 4  ;;  %v963_v43 = vrot.slane %v3422_v24, 4  ;;  %v155_v35 = vadd.f32 %v154_v19, %v153_v13  ;;  %v161_v23 = vadd.f32 %v160_v11, %v159_v47 }
  0xd8   :  { %v908_v0 = vpop.permute.xlu1 %907  ;;  %v905_v59 = vpop.permute.xlu0 %904  ;;  %v166_v63 = vrot.slane %v165_v17, 2  ;;  %v201_v32 = vsel %vm200_vm11, %v139_v42, %v133_v10  ;;  %v948_v47 = vadd.f32 %v947_v40, %v946_v22  ;;  %v954_v40 = vadd.f32 %v953_v29, %v952_v16 }
  0xd9   :  { %vm916_vm2 = vcmp.eq.s32.totalorder %v908_v0, %v5954_v2  ;;  %v171_v31 = vadd.f32 %v3414_v41, %v170_v1  ;;  %vm915_vm3 = vcmp.eq.s32.totalorder %v905_v59, %v5954_v2  ;;  %v958_v41 = vadd.f32 %v3421_v57, %v957_v9 }
  0xda   :  { %v3423_v33 = vsel %vm915_vm3, 1.0, %v7758_v18  ;;  %v3424_v12 = vsel %vm916_vm2, 1.0, %v7758_v18  ;;  %v150_v59 = vrot.slane %v149_v5, 1  ;;  %v167_v10 = vadd.f32 %v166_v63, %v165_v17 }
  0xdb   :  { %v172_v30 = vrot.slane %v171_v31, 2  ;;  %v969_v1 = vrot.slane %v3423_v33, 4  ;;  %v964_v42 = vadd.f32 %v3422_v24, %v963_v43  ;;  %v975_v13 = vrot.slane %v3424_v12, 4 }
  0xdc   :  { %v6048_v27 = vpop.permute.xlu1 %1019  ;;  %v6050_v44 = vpop.permute.xlu0 %1017  ;;  %v156_v11 = vrot.slane %v155_v35, 1  ;;  %v937_v63 = vrot.slane %v6034_v48, 1  ;;  %v203_v24 = vsel %vm202_vm15, %v6017_v49, %v201_v32  ;;  %v162_v43 = vrot.slane %v161_v23, 1 }
  0xdd   :  { %v7583_v0 = vand.u32 4294901760, %v6050_v44  ;;  %v173_v36 = vadd.f32 %v172_v30, %v171_v31  ;;  %v970_v19 = vadd.f32 %v3423_v33, %v969_v1  ;;  %v7762_v50 = vand.u32 4294901760, %v6048_v27 }
  0xde   :  { %v959_v57 = vrot.slane %v958_v41, 2  ;;  %v151_v31 = vadd.f32 %v150_v59, %v149_v5  ;;  %v943_v17 = vrot.slane %v942_v21, 1  ;;  %v168_v9 = vrot.slane %v167_v10, 1 }
  0xdf   :  { %v6065_v39 = vpack.c.bf16 %v7762_v50, %v7583_v0  ;;  %v965_v33 = vrot.slane %v964_v42, 2  ;;  %v174_v1 = vrot.slane %v173_v36, 1  ;;  %v976_v50 = vadd.f32 %v3424_v12, %v975_v13 }
  0xe0   :  { %v6057_v34 = vpop.permute.xlu1 %1023  ;;  %v6059_v6 = vpop.permute.xlu0 %1021  ;;  %v971_v0 = vrot.slane %v970_v19, 2  ;;  %v157_v56 = vadd.f32 %v156_v11, %v155_v35  ;;  %v949_v49 = vrot.slane %v948_v47, 1  ;;  %v163_v5 = vadd.f32 %v162_v43, %v161_v23 }
  0xe1   :  { %7763 = vst [vmem:[#allocation32_spill] sm:$0xff] %v6065_v39  ;;  %4842 = vmatpush3.bf16.msra.mxu1 %v6065_v39  ;;  %v1077_v32 = vand.u32 4294901760, %v6057_v34  ;;  %v1074_v39 = vand.u32 4294901760, %v6059_v6  ;;  %v960_v59 = vadd.f32 %v959_v57, %v958_v41  ;;  %v205_v15 = vsel %vm204_vm4, %v151_v31, %v203_v24 }
  0xe2   :  { %4843 = vmatprep.subr.bf16.mxu1 %v7760_v28  ;;  %v169_v3 = vadd.f32 %v168_v9, %v167_v10  ;;  %v966_v8 = vadd.f32 %v965_v33, %v964_v42  ;;  %v955_v12 = vrot.slane %v954_v40, 1  ;;  %v175_v23 = vadd.f32 %v174_v1, %v173_v36 }
  0xe3   :  { %v6085_v16 = vpack.c.bf16 %v1077_v32, %v1074_v39  ;;  %v977_v41 = vrot.slane %v976_v50, 2  ;;  %v972_v13 = vadd.f32 %v971_v0, %v970_v19  ;;  %v938_v11 = vadd.f32 %v937_v63, %v6034_v48 }
  0xe4   :  { %v6071_v30 = vpop.permute.xlu1 %1027  ;;  %v6074_v22 = vpop.permute.xlu0 %1025  ;;  %v207_v24 = vsel %vm206_vm5, %v157_v56, %v205_v15  ;;  %v944_v42 = vadd.f32 %v943_v17, %v942_v21  ;;  %v961_v57 = vrot.slane %v960_v59, 1  ;;  %v950_v48 = vadd.f32 %v949_v49, %v948_v47 }
  0xe5   :  { %v1083_v26 = vand.u32 4294901760, %v6071_v30  ;;  %v1080_v55 = vand.u32 4294901760, %v6074_v22  ;;  %7764 = vst [vmem:[#allocation33_spill] sm:$0xff] %v6085_v16  ;;  %4845 = vmatpush3.bf16.msra.mxu1 %v6085_v16  ;;  %v209_v43 = vsel %vm208_vm6, %v163_v5, %v207_v24  ;;  %v967_v56 = vrot.slane %v966_v8, 1 }
  0xe6   :  { %4846 = vmatprep.subr.bf16.mxu1 %v7760_v28  ;;  %v211_v15 = vsel %vm210_vm7, %v169_v3, %v209_v43  ;;  %v956_v31 = vadd.f32 %v955_v12, %v954_v40  ;;  %v978_v9 = vadd.f32 %v977_v41, %v976_v50  ;;  %v973_v21 = vrot.slane %v972_v13, 1 }
  0xe7   :  { %v6097_v10 = vpack.c.bf16 %v1083_v26, %v1080_v55  ;;  %v213_v17 = vsel %vm212_vm8, %v175_v23, %v211_v15  ;;  %v989_v47 = vsel %vm200_vm11, %v944_v42, %v938_v11  ;;  %v962_v1 = vadd.f32 %v961_v57, %v960_v59 }
  0xe8   :  { %v6087_v29 = vpop.permute.xlu1 %1031  ;;  %v6089_v35 = vpop.permute.xlu0 %1029  ;;  %v990_v40 = vsel %vm202_vm15, %v950_v48, %v989_v47  ;;  %v968_v50 = vadd.f32 %v967_v56, %v966_v8  ;;  %v6122_v5 = vand.u32 4294901760, %v213_v17  ;;  %v979_v24 = vrot.slane %v978_v9, 1 }
  0xe9   :  { %7765 = vst [vmem:[#allocation34_spill] sm:$0xff] %v6097_v10  ;;  %v1089_v36 = vand.u32 4294901760, %v6087_v29  ;;  %v7607_v0 = vand.u32 4294901760, %v6089_v35  ;;  %4848 = vmatpush3.bf16.msra.mxu1 %v6097_v10  ;;  %v991_v41 = vsel %vm204_vm4, %v956_v31, %v990_v40  ;;  %v974_v43 = vadd.f32 %v973_v21, %v972_v13 }
  0xea   :  { %4849 = vmatprep.subr.bf16.mxu1 %v7760_v28  ;;  %v6137_v8 = vsub.f32 %v213_v17, %v6122_v5  ;;  %v992_v57 = vsel %vm206_vm5, %v962_v1, %v991_v41  ;;  %v7768_v48 = vand.u32 4294901760, %v6048_v27  ;;  %v7769_v15 = vand.u32 4294901760, %v6050_v44 }
  0xeb   :  { %v6114_v33 = vpack.c.bf16 %v1089_v36, %v7607_v0  ;;  %v993_v31 = vsel %vm208_vm6, %v968_v50, %v992_v57  ;;  %v7770_v1 = vand.u32 4294901760, %v6011_v25  ;;  %v980_v40 = vadd.f32 %v979_v24, %v978_v9 }
  0xec   :  { %v6105_v19 = vpop.permute.xlu1 %1035  ;;  %v6107_v63 = vpop.permute.xlu0 %1033  ;;  %v6145_v13 = vsub.f32 %v6048_v27, %v7768_v48  ;;  %v6150_v56 = vsub.f32 %v6050_v44, %v7769_v15  ;;  %v7598_v21 = vand.u32 4294901760, %v6137_v8  ;;  %v994_v41 = vsel %vm210_vm7, %v974_v43, %v993_v31 }
  0xed   :  { %7766 = vst [vmem:[#allocation35_spill] sm:$0xff] %v6114_v33  ;;  %v7606_v3 = vand.u32 4294901760, %v6105_v19  ;;  %v7601_v49 = vand.u32 4294901760, %v6107_v63  ;;  %4851 = vmatpush3.bf16.msra.mxu1 %v6114_v33  ;;  %v6162_v27 = vsub.f32 %v6011_v25, %v7770_v1 }
  0xee   :  { %4852 = vmatprep.subr.bf16.mxu1 %v7760_v28  ;;  %v299_v44 = vsub.f32 %v6137_v8, %v7598_v21  ;;  %v7602_v9 = vand.u32 4294901760, %v6145_v13  ;;  %v7603_v24 = vand.u32 4294901760, %v6150_v56  ;;  %v7772_v21 = vand.u32 4294901760, %v6019_v52 }
  0xef   :  { %v6133_v59 = vpack.c.bf16 %v7606_v3, %v7601_v49  ;;  %v6191_v49 = vsub.f32 %v6057_v34, %v1077_v32 }
  0xf0   :  { %v6124_v12 = vpop.permute.xlu1 %1039  ;;  %v6126_v23 = vpop.permute.xlu0 %1037  ;;  %v300_v43 = vand.u32 4294901760, %v299_v44  ;;  %v6210_v34 = vsub.f32 %v6150_v56, %v7603_v24 }
  0xf1   :  { %7767 = vst [vmem:[#allocation36_spill] sm:$0xff] %v6133_v59  ;;  %v7600_v11 = vand.u32 4294901760, %v6124_v12  ;;  %v7599_v42 = vand.u32 4294901760, %v6126_v23  ;;  %4854 = vmatpush3.bf16.msra.mxu1 %v6133_v59 }
  0xf2   :  { %4855 = vmatprep.subr.bf16.mxu1 %v7760_v28  ;;  %3886 = vmatmul.mubr.f32.vlgmr.msra.gmra.mrb[0].mxu0 %v300_v43  ;;  %v6218_v43 = vsub.f32 %v6059_v6, %v1074_v39  ;;  %v6236_v6 = vsub.f32 %v6074_v22, %v1080_v55  ;;  %v7608_v39 = vand.u32 4294901760, %v6191_v49  ;;  %v1171_v1 = vand.u32 4294901760, %v6210_v34 }
  0xf3   :  { %v6172_v50 = vpack.c.bf16 %v7600_v11, %v7599_v42  ;;  %v6184_v42 = vsub.f32 %v6019_v52, %v7772_v21  ;;  %v995_v11 = vsel %vm212_vm8, %v980_v40, %v994_v41  ;;  %v6205_v40 = vsub.f32 %v6145_v13, %v7602_v9  ;;  %4719 = vmatpush3.bf16.msra.mxu0 %v5766_v58 }
  0xf4   :  { %v6155_v17 = vpop.permute.xlu1 %1043  ;;  %v6157_v47 = vpop.permute.xlu0 %1041  ;;  %4720 = vmatprep.subr.bf16.mxu0 %v7760_v28  ;;  %v6226_v58 = vand.u32 4294901760, %v995_v11  ;;  %3920 = vmatprep.mubr.msk.f32.mxu0 %vm5406_vm0, %v7758_v18  ;;  %v7783_v33 = vand.u32 4294901760, %v6236_v6 }
  0xf5   :  { %7771 = vst [vmem:[#allocation37_spill] sm:$0xff] %v6172_v50  ;;  %v7605_v57 = vand.u32 4294901760, %v6155_v17  ;;  %v7604_v48 = vand.u32 4294901760, %v6157_v47  ;;  %4857 = vmatpush3.bf16.msra.mxu1 %v6172_v50 }
  0xf6   :  { %4858 = vmatprep.subr.bf16.mxu1 %v7760_v28  ;;  %7774 = vst [vmem:[#allocation39_spill] sm:$0xff] %v6226_v58  ;;  %v6243_v3 = vsub.f32 %v995_v11, %v6226_v58  ;;  %v1198_v10 = vsub.f32 %v6236_v6, %v7783_v33 }
  0xf7   :  { %v6197_v44 = vpack.c.bf16 %v7605_v57, %v7604_v48  ;;  %v1164_v48 = vand.u32 4294901760, %v6184_v42  ;;  %v1178_v42 = vand.u32 4294901760, %v6205_v40  ;;  %4722 = vmatpush3.bf16.msra.mxu0 %v5790_v37 }
  0xf8   :  { %v1736_v15 = vpop.permute.xlu1 %1735  ;;  %v1733_v31 = vpop.permute.xlu0 %1732  ;;  %4723 = vmatprep.subr.bf16.mxu0 %v7760_v28  ;;  %v7609_v11 = vand.u32 4294901760, %v6243_v3 }
  0xf9   :  { %vm1756_vm9 = vcmp.eq.s32.totalorder %v1736_v15, %v5954_v2  ;;  %7773 = vst [vmem:[#allocation38_spill] sm:$0xff] %v6197_v44  ;;  %vm1755_vm10 = vcmp.eq.s32.totalorder %v1733_v31, %v5954_v2  ;;  %v6223_v15 = vsub.f32 %v6071_v30, %v1083_v26  ;;  %4860 = vmatpush3.bf16.msra.mxu1 %v6197_v44 }
  0xfa   :  { %v3428_v21 = vsel %vm1756_vm9, 1.0, %v7758_v18  ;;  %v3427_v41 = vsel %vm1755_vm10, 1.0, %v7758_v18  ;;  %4861 = vmatprep.subr.bf16.mxu1 %v7760_v28 }
  0xfb   :  { %v1785_v32 = vrot.slane %v3428_v21, 4  ;;  %v1779_v31 = vrot.slane %v3427_v41, 4  ;;  %4725 = vmatpush3.bf16.msra.mxu0 %v5804_v14 }
  0xfc   :  { %v2563_v9 = vpop.permute.xlu1 %2562  ;;  %v6228_v24 = vpop.permute.xlu0 %1738  ;;  %4726 = vmatprep.subr.bf16.mxu0 %v7760_v28 }
  0xfd   :  { %7775 = vst [vmem:[#allocation40_spill] sm:$0xff] %v6228_v24  ;;  %v1786_v26 = vadd.f32 %v3428_v21, %v1785_v32  ;;  %vm2585_vm12 = vcmp.eq.s32.totalorder %v2563_v9, %v5954_v2  ;;  %v1780_v30 = vadd.f32 %v3427_v41, %v1779_v31  ;;  %v6260_v9 = vsub.f32 %v6191_v49, %v7608_v39 }
  0xfe   :  { %v3437_v57 = vsel %vm2585_vm12, 1.0, %v7758_v18  ;;  %v6265_v21 = vsub.f32 %v6087_v29, %v1089_v36  ;;  %v7778_v39 = vand.u32 4294901760, %v6218_v43  ;;  %v7782_v24 = vand.u32 4294901760, %v6162_v27 }
  0xff   :  { %v1787_v55 = vrot.slane %v1786_v26, 2  ;;  %v2609_v22 = vrot.slane %v3437_v57, 4  ;;  %v1781_v32 = vrot.slane %v1780_v30, 2  ;;  %4728 = vmatpush3.bf16.msra.mxu0 %v5819_v20 }
 0x100   :  { %v6253_v41 = vpop.permute.xlu1 %1741  ;;  %v2566_v40 = vpop.permute.xlu0 %2565  ;;  %v1184_v29 = vsub.f32 %v6218_v43, %v7778_v39  ;;  %v7626_v16 = vand.u32 4294901760, %v6265_v21  ;;  %4729 = vmatprep.subr.bf16.mxu0 %v7760_v28 }
 0x101   :  { %7776 = vst [vmem:[#allocation41_spill] sm:$0xff] %v6253_v41  ;;  %v1788_v31 = vadd.f32 %v1787_v55, %v1786_v26  ;;  %v2610_v37 = vadd.f32 %v3437_v57, %v2609_v22  ;;  %vm2586_vm13 = vcmp.eq.s32.totalorder %v2566_v40, %v5954_v2  ;;  %v1782_v0 = vadd.f32 %v1781_v32, %v1780_v30 }
 0x102   :  { %v1145_v41 = vsub.f32 %v6243_v3, %v7609_v11  ;;  %v7777_v26 = vand.u32 4294901760, %v6089_v35  ;;  %v3438_v40 = vsel %vm2586_vm13, 1.0, %v7758_v18  ;;  %v4862_v2 = vpack.c.bf16 %v1164_v48, %v7782_v24 }
 0x103   :  { %v1789_v55 = vrot.slane %v1788_v31, 1  ;;  %v2611_v22 = vrot.slane %v2610_v37, 2  ;;  %v1783_v36 = vrot.slane %v1782_v0, 1  ;;  %v2615_v32 = vrot.slane %v3438_v40, 4  ;;  %4731 = vmatpush3.bf16.msra.mxu0 %v5880_v60 }
 0x104   :  { %v6273_v57 = vsub.f32 %v6089_v35, %v7777_v26  ;;  %v1146_v30 = vand.u32 4294901760, %v1145_v41  ;;  %v6281_v11 = vpop.permute.xlu1 %1845  ;;  %v6283_v34 = vpop.permute.xlu0 %1843  ;;  %v7781_v35 = vand.u32 4294901760, %v6223_v15  ;;  %v7785_v48 = vand.u32 4294901760, %v6107_v63  ;;  %4732 = vmatprep.subr.bf16.mxu0 %v7760_v28 }
 0x105   :  { %7779 = vst [vmem:[#allocation42_spill] sm:$0xff] %v6281_v11  ;;  %7780 = vst [vmem:[#allocation43_spill] sm:$0xff] %v6283_v34  ;;  %v1790_v26 = vadd.f32 %v1789_v55, %v1788_v31  ;;  %v7624_v39 = vand.u32 4294901760, %v6281_v11  ;;  %v1784_v44 = vadd.f32 %v1783_v36, %v1782_v0  ;;  %v2612_v50 = vadd.f32 %v2611_v22, %v2610_v37 }
 0x106   :  { %v6288_v14 = vsub.f32 %v6223_v15, %v7781_v35  ;;  %4096 = vmatmul.mubr.f32.vlgmr.msra.gmra.mrb[0].mxu1 %v1146_v30  ;;  %v2616_v41 = vadd.f32 %v3438_v40, %v2615_v32  ;;  %v7625_v59 = vand.u32 4294901760, %v6283_v34  ;;  %v1211_v35 = vand.u32 4294901760, %v6273_v57 }
 0x107   :  { %v7784_v31 = vand.u32 4294901760, %v6105_v19  ;;  %4863 = vmatpush3.bf16.msra.mxu1 %v4862_v2  ;;  %v1192_v0 = vand.u32 4294901760, %v6260_v9  ;;  %v6309_v24 = vsub.f32 %v6107_v63, %v7785_v48  ;;  %v6312_v33 = vsel %vm200_vm11, %v1790_v26, %v1784_v44  ;;  %4130 = vmatprep.mubr.msk.f32.mxu1 %vm5406_vm0, %v7758_v18 }
 0x108   :  { %7786 = vst [vmem:[#allocation44_spill] sm:$0xff] %v6312_v33  ;;  %4864 = vmatprep.subr.bf16.mxu1 %v7760_v28  ;;  %v2617_v37 = vrot.slane %v2616_v41, 2  ;;  %v6318_v55 = vpop.permute.xlu0 %2568  ;;  %v1185_v20 = vand.u32 4294901760, %v1184_v29  ;;  %v4865_v2 = vpack.c.bf16 %v1178_v42, %v1171_v1  ;;  %v6323_v9 = vsub.f32 %v6281_v11, %v7624_v39  ;;  %4734 = vmatpush3.bf16.msra.mxu0 %v5908_v51  ;;  %v7830_v11 = vld [vmem:[#allocation25_spill] sm:$0xff] }
 0x109   :  { %v6302_v27 = vsub.f32 %v6105_v19, %v7784_v31  ;;  %v6316_v19 = vpop.permute.xlu1 %1744  ;;  %7787 = vst [vmem:[#allocation45_spill] sm:$0xff] %v6318_v55  ;;  %v6328_v63 = vsub.f32 %v6283_v34, %v7625_v59  ;;  %v2613_v44 = vrot.slane %v2612_v50, 1  ;;  %v1219_v40 = vsub.f32 %v6265_v21, %v7626_v16  ;;  %4735 = vmatprep.subr.bf16.mxu0 %v7760_v28  ;;  %v7850_v55 = vld [vmem:[#allocation17_spill] sm:$0xff] }
 0x10a   :  { %7788 = vst [vmem:[#allocation46_spill] sm:$0xff] %v6323_v9  ;;  %v2618_v22 = vadd.f32 %v2617_v37, %v2616_v41  ;;  %v1212_v1 = vsub.f32 %v6273_v57, %v1211_v35  ;;  %v7632_v36 = vand.u32 4294901760, %v6309_v24  ;;  %v7790_v30 = vand.u32 4294901760, %v6124_v12 }
 0x10b   :  { %7789 = vst [vmem:[#allocation47_spill] sm:$0xff] %v6328_v63  ;;  %v7631_v42 = vand.u32 4294901760, %v6302_v27  ;;  %4866 = vmatpush3.bf16.msra.mxu1 %v4865_v2  ;;  %v7791_v26 = vand.u32 4294901760, %v6126_v23  ;;  %v1206_v37 = vand.u32 4294901760, %v6288_v14  ;;  %v1199_v2 = vand.u32 4294901760, %v1198_v10 }
 0x10c   :  { %v6346_v32 = vsub.f32 %v6124_v12, %v7790_v30  ;;  %v2619_v31 = vrot.slane %v2618_v22, 1  ;;  %4867 = vmatprep.subr.bf16.mxu1 %v7760_v28  ;;  %v6357_v48 = vpop.permute.xlu0 %2571  ;;  %v4868_v29 = vpack.c.bf16 %v1192_v0, %v1185_v20  ;;  %v2614_v12 = vadd.f32 %v2613_v44, %v2612_v50  ;;  %4737 = vmatpush3.bf16.msra.mxu0 %v5910_v38 }
 0x10d   :  { %v6351_v41 = vsub.f32 %v6126_v23, %v7791_v26  ;;  %v6355_v60 = vpop.permute.xlu1 %2673  ;;  %7793 = vst [vmem:[#allocation49_spill] sm:$0xff] %v6357_v48  ;;  %v1220_v39 = vand.u32 4294901760, %v1219_v40  ;;  %v1213_v59 = vand.u32 4294901760, %v1212_v1  ;;  %v1233_v23 = vsub.f32 %v6302_v27, %v7631_v42  ;;  %4738 = vmatprep.subr.bf16.mxu0 %v7760_v28 }
 0x10e   :  { %7792 = vst [vmem:[#allocation48_spill] sm:$0xff] %v6355_v60  ;;  %v2620_v30 = vadd.f32 %v2619_v31, %v2618_v22  ;;  %v7628_v26 = vand.u32 4294901760, %v6355_v60  ;;  %v1226_v16 = vsub.f32 %v6309_v24, %v7632_v36  ;;  %v7629_v10 = vand.u32 4294901760, %v6346_v32 }
 0x10f   :  { %4869 = vmatpush3.bf16.msra.mxu1 %v4868_v29  ;;  %v7630_v50 = vand.u32 4294901760, %v6351_v41  ;;  %v7796_v51 = vand.u32 4294901760, %v6155_v17  ;;  %v7797_v44 = vand.u32 4294901760, %v6157_v47  ;;  %v4871_v40 = vpack.c.bf16 %v1206_v37, %v1199_v2 }
 0x110   :  { %v6371_v14 = vsel %vm200_vm11, %v2620_v30, %v2614_v12  ;;  %4870 = vmatprep.subr.bf16.mxu1 %v7760_v28  ;;  %v6375_v0 = vpop.permute.xlu0 %2675  ;;  %v6394_v31 = vsub.f32 %v6355_v60, %v7628_v26  ;;  %v1227_v12 = vand.u32 4294901760, %v1226_v16  ;;  %v1247_v37 = vsub.f32 %v6346_v32, %v7629_v10  ;;  %4740 = vmatpush3.bf16.msra.mxu0 %v5930_v46 }
 0x111   :  { %7794 = vst [vmem:[#allocation50_spill] sm:$0xff] %v6371_v14  ;;  %7795 = vst [vmem:[#allocation51_spill] sm:$0xff] %v6375_v0  ;;  %v6380_v20 = vsub.f32 %v6155_v17, %v7796_v51  ;;  %v6385_v22 = vsub.f32 %v6157_v47, %v7797_v44  ;;  %v6387_v1 = vpop.permute.xlu1 %1747  ;;  %v7627_v29 = vand.u32 4294901760, %v6375_v0  ;;  %v1234_v47 = vand.u32 4294901760, %v1233_v23  ;;  %4741 = vmatprep.subr.bf16.mxu0 %v7760_v28 }
 0x112   :  { %7798 = vst [vmem:[#allocation52_spill] sm:$0xff] %v6394_v31  ;;  %v1240_v38 = vsub.f32 %v6351_v41, %v7630_v50  ;;  %v4874_v51 = vpack.c.bf16 %v1220_v39, %v1213_v59  ;;  %v7801_v46 = vpack.c.bf16 %v5703_v54, %v5698_v53  ;;  %v7818_v50 = vand.u32 4294901760, %v6223_v15 }
 0x113   :  { %4872 = vmatpush3.bf16.msra.mxu1 %v4871_v40  ;;  %v6399_v17 = vsub.f32 %v6375_v0, %v7627_v29  ;;  %v1260_v2 = vand.u32 4294901760, %v6380_v20  ;;  %v1253_v30 = vand.u32 4294901760, %v6385_v22  ;;  %v1248_v40 = vand.u32 4294901760, %v1247_v37  ;;  %3921 = vmatmul.mubr.f32.vlgmr.msra.gmra.mrb[0].mxu0 %v6122_v5 }
 0x114   :  { %4873 = vmatprep.subr.bf16.mxu1 %v7760_v28  ;;  %v6416_v44 = vpop.permute.xlu0 %2574  ;;  %v1241_v29 = vand.u32 4294901760, %v1240_v38  ;;  %v4877_v39 = vpack.c.bf16 %v1234_v47, %v1227_v12  ;;  %4743 = vmatpush3.bf16.msra.mxu0 %v7801_v46  ;;  %v7804_v47 = vpack.c.bf16 %v5732_v7, %v5727_v4  ;;  %v4889_v46 = vpack.c.bf16 %v6145_v13, %v6150_v56 }
 0x115   :  { %7799 = vst [vmem:[#allocation53_spill] sm:$0xff] %v6399_v17  ;;  %v6414_v23 = vpop.permute.xlu1 %1750  ;;  %7800 = vst [vmem:[#allocation54_spill] sm:$0xff] %v6416_v44  ;;  %v1261_v26 = vsub.f32 %v6380_v20, %v1260_v2  ;;  %v1254_v59 = vsub.f32 %v6385_v22, %v1253_v30  ;;  %4744 = vmatprep.subr.bf16.mxu0 %v7760_v28  ;;  %3955 = vmatprep.mubr.msk.f32.mxu0 %vm5406_vm0, %v7758_v18  ;;  %v7822_v14 = vand.u32 4294901760, %v6309_v24 }
 0x116   :  { %v4880_v16 = vpack.c.bf16 %v1248_v40, %v1241_v29  ;;  %v7823_v0 = vand.u32 4294901760, %v6302_v27 }
 0x117   :  { %4875 = vmatpush3.bf16.msra.mxu1 %v4874_v51  ;;  %v1262_v37 = vand.u32 4294901760, %v1261_v26  ;;  %v1255_v51 = vand.u32 4294901760, %v1254_v59  ;;  %v7805_v26 = vpack.c.bf16 %v5760_v62, %v5755_v61  ;;  %v4886_v59 = vpack.c.bf16 %v6019_v52, %v6011_v25  ;;  %v7812_v25 = vld [vmem:[#allocation22_spill] sm:$0xff]  ;;  %v7813_v52 = vld [vmem:[#allocation21_spill] sm:$0xff] }
 0x118   :  { %4876 = vmatprep.subr.bf16.mxu1 %v7760_v28  ;;  %v6430_v10 = vpop.permute.xlu0 %2577  ;;  %4746 = vmatpush3.bf16.msra.mxu0 %v7804_v47  ;;  %v7814_v47 = vpack.c.bf16 %v7812_v25, %v7813_v52  ;;  %v6497_v60 = vpack.c.bf16 %v7823_v0, %v7822_v14  ;;  %v4895_v14 = vpack.c.bf16 %v6223_v15, %v6236_v6  ;;  %v7829_v0 = vld [vmem:[#allocation26_spill] sm:$0xff] }
 0x119   :  { %v6428_v38 = vpop.permute.xlu1 %1753  ;;  %7803 = vst [vmem:[#allocation56_spill] sm:$0xff] %v6430_v10  ;;  %4747 = vmatprep.subr.bf16.mxu0 %v7760_v28  ;;  %v4883_v12 = vpack.c.bf16 %v1262_v37, %v1255_v51  ;;  %v7831_v34 = vpack.c.bf16 %v7829_v0, %v7830_v11  ;;  %v4901_v15 = vpack.c.bf16 %v6302_v27, %v6309_v24 }
 0x11a   :  { %7802 = vst [vmem:[#allocation55_spill] sm:$0xff] %v6428_v38 }
 0x11b   :  { %4878 = vmatpush3.bf16.msra.mxu1 %v4877_v39 }
 0x11c   :  { %4879 = vmatprep.subr.bf16.mxu1 %v7760_v28  ;;  %4749 = vmatpush3.bf16.msra.mxu0 %v7805_v26  ;;  %v6444_v40 = vpop.permute.xlu0 %1847  ;;  %v7816_v26 = vand.u32 4294901760, %v6191_v49 }
 0x11d   :  { %v6442_v29 = vpop.permute.xlu1 %1849  ;;  %7807 = vst [vmem:[#allocation58_spill] sm:$0xff] %v6444_v40  ;;  %4750 = vmatprep.subr.bf16.mxu0 %v7760_v28 }
 0x11e   :  { %7806 = vst [vmem:[#allocation57_spill] sm:$0xff] %v6442_v29 }
 0x11f   :  { %4881 = vmatpush3.bf16.msra.mxu1 %v4880_v16  ;;  %v7808_v16 = vld [vmem:[#allocation20_spill] sm:$0xff] }
 0x120   :  { %4882 = vmatprep.subr.bf16.mxu1 %v7760_v28  ;;  %v7809_v39 = vpack.c.bf16 %v5782_v45, %v7808_v16  ;;  %v6460_v51 = vpop.permute.xlu0 %2580 }
 0x121   :  { %v6458_v37 = vpop.permute.xlu1 %2583  ;;  %7811 = vst [vmem:[#allocation59_spill] sm:$0xff] %v6460_v51 }
 0x122   :  { %4752 = vmatpush3.bf16.msra.mxu0 %v7809_v39  ;;  %7810 = vst [vmem:[#allocation20_spill] sm:$0xff] %v6458_v37  ;;  %v7817_v39 = vand.u32 4294901760, %v6236_v6 }
 0x123   :  { %4884 = vmatpush3.bf16.msra.mxu1 %v4883_v12  ;;  %4753 = vmatprep.subr.bf16.mxu0 %v7760_v28  ;;  %v7815_v12 = vand.u32 4294901760, %v6218_v43 }
 0x124   :  { %4885 = vmatprep.subr.bf16.mxu1 %v7760_v28  ;;  %v6479_v42 = vpack.c.bf16 %v7818_v50, %v7817_v39  ;;  %v7824_v50 = vand.u32 4294901760, %v6351_v41  ;;  %v6505_v39 = vpack.c.bf16 %v1260_v2, %v1253_v30  ;;  %v7834_v30 = vld [vmem:[#allocation28_spill] sm:$0xff] }
 0x126   :  { %4131 = vmatmul.mubr.f32.vlgmr.msra.gmra.mrb[0].mxu1 %v6226_v58  ;;  %4755 = vmatpush3.bf16.msra.mxu0 %v7814_v47  ;;  %v4892_v47 = vpack.c.bf16 %v6191_v49, %v6218_v43  ;;  %v7825_v49 = vand.u32 4294901760, %v6346_v32 }
 0x127   :  { %4887 = vmatpush3.bf16.msra.mxu1 %v4886_v59  ;;  %4165 = vmatprep.mubr.msk.f32.mxu1 %vm5406_vm0, %v7758_v18  ;;  %v6471_v59 = vpack.c.bf16 %v7816_v26, %v7815_v12  ;;  %v6489_v12 = vpop.permute.xlu1 %2679  ;;  %v6491_v26 = vpop.permute.xlu0 %2677 }
 0x128   :  { %4888 = vmatprep.subr.bf16.mxu1 %v7760_v28  ;;  %4756 = vmatprep.subr.bf16.mxu0 %v7760_v28  ;;  %7820 = vst [vmem:[#allocation22_spill] sm:$0xff] %v6489_v12  ;;  %7821 = vst [vmem:[#allocation21_spill] sm:$0xff] %v6491_v26  ;;  %v6503_v43 = vpack.c.bf16 %v7825_v49, %v7824_v50 }
 0x12b   :  { %4890 = vmatpush3.bf16.msra.mxu1 %v4889_v46  ;;  %v7819_v46 = vand.u32 4294901760, %v6265_v21  ;;  %v6517_v50 = vpop.permute.xlu1 %1853  ;;  %v6519_v2 = vpop.permute.xlu0 %1851 }
 0x12c   :  { %4891 = vmatprep.subr.bf16.mxu1 %v7760_v28 }
 0x12d   :  { %v6487_v36 = vpack.c.bf16 %v7819_v46, %v1211_v35  ;;  %v7826_v35 = vld [vmem:[#allocation24_spill] sm:$0xff]  ;;  %v7827_v46 = vld [vmem:[#allocation23_spill] sm:$0xff] }
 0x12e   :  { %v7828_v33 = vpack.c.bf16 %v7826_v35, %v7827_v46  ;;  %7832 = vst [vmem:[#allocation24_spill] sm:$0xff] %v6517_v50  ;;  %7833 = vst [vmem:[#allocation23_spill] sm:$0xff] %v6519_v2 }
 0x12f   :  { %4893 = vmatpush3.bf16.msra.mxu1 %v4892_v47  ;;  %v7835_v47 = vld [vmem:[#allocation27_spill] sm:$0xff]  ;;  %v6532_v6 = vpop.permute.xlu1 %2683 }
 0x130   :  { %4758 = vmatpush3.bf16.msra.mxu0 %v7828_v33  ;;  %4894 = vmatprep.subr.bf16.mxu1 %v7760_v28  ;;  %v4898_v33 = vpack.c.bf16 %v6265_v21, %v6273_v57  ;;  %v7836_v49 = vpack.c.bf16 %v7834_v30, %v7835_v47  ;;  %7837 = vst [vmem:[#allocation26_spill] sm:$0xff] %v6532_v6  ;;  %v7840_v57 = vld [vmem:[#allocation13_spill] sm:$0xff] }
 0x131   :  { %4759 = vmatprep.subr.bf16.mxu0 %v7760_v28  ;;  %v4904_v21 = vpack.c.bf16 %v6346_v32, %v6351_v41  ;;  %v4907_v32 = vpack.c.bf16 %v6380_v20, %v6385_v22  ;;  %v7842_v41 = vld [vmem:[#allocation14_spill] sm:$0xff]  ;;  %v7845_v20 = vld [vmem:[#allocation15_spill] sm:$0xff] }
 0x132   :  { %v7846_v22 = vld [vmem:[#allocation30_spill] sm:$0xff] }
 0x133   :  { %4896 = vmatpush3.bf16.msra.mxu1 %v4895_v14  ;;  %v7839_v14 = vld [vmem:[#allocation12_spill] sm:$0xff]  ;;  %v6545_v27 = vpop.permute.xlu1 %1857 }
 0x134   :  { %4761 = vmatpush3.bf16.msra.mxu0 %v7831_v34  ;;  %4897 = vmatprep.subr.bf16.mxu1 %v7760_v28  ;;  %v6534_v34 = vpop.permute.xlu0 %2681  ;;  %7841 = vst [vmem:[#allocation28_spill] sm:$0xff] %v6545_v27 }
 0x135   :  { %4762 = vmatprep.subr.bf16.mxu0 %v7760_v28  ;;  %7838 = vst [vmem:[#allocation25_spill] sm:$0xff] %v6534_v34 }
 0x137   :  { %4899 = vmatpush3.bf16.msra.mxu1 %v4898_v33  ;;  %v7637_v33 = vand.u32 4294901760, %v6323_v9  ;;  %v6564_v37 = vpop.permute.xlu1 %2687 }
 0x138   :  { %4764 = vmatpush3.bf16.msra.mxu0 %v7836_v49  ;;  %4900 = vmatprep.subr.bf16.mxu1 %v7760_v28  ;;  %v6547_v24 = vpop.permute.xlu0 %1855  ;;  %v7638_v49 = vand.u32 4294901760, %v6328_v63  ;;  %7843 = vst [vmem:[#allocation27_spill] sm:$0xff] %v6564_v37 }
 0x139   :  { %4765 = vmatprep.subr.bf16.mxu0 %v7760_v28 }
 0x13b   :  { %3956 = vmatmul.mubr.f32.vlgmr.msra.gmra.mrb[0].mxu0 %v6137_v8  ;;  %4902 = vmatpush3.bf16.msra.mxu1 %v4901_v15  ;;  %v1993_v15 = vsub.f32 %v6323_v9, %v7637_v33  ;;  %v7848_v9 = vld [vmem:[#allocation32_spill] sm:$0xff]  ;;  %v6578_v10 = vpop.permute.xlu1 %1861 }
 0x13c   :  { %4767 = vmatpush3.bf16.msra.mxu0 %v7839_v14  ;;  %4903 = vmatprep.subr.bf16.mxu1 %v7760_v28  ;;  %v6566_v51 = vpop.permute.xlu0 %2685 }
 0x13d   :  { %4768 = vmatprep.subr.bf16.mxu0 %v7760_v28  ;;  %3990 = vmatprep.mubr.msk.f32.mxu0 %vm5406_vm0, %v7758_v18  ;;  %7844 = vst [vmem:[#allocation12_spill] sm:$0xff] %v6566_v51 }
 0x13f   :  { %4905 = vmatpush3.bf16.msra.mxu1 %v4904_v21  ;;  %v1986_v21 = vsub.f32 %v6328_v63, %v7638_v49  ;;  %v7643_v49 = vand.u32 4294901760, %v6394_v31  ;;  %v7847_v63 = vld [vmem:[#allocation16_spill] sm:$0xff] }
 0x140   :  { %4770 = vmatpush3.bf16.msra.mxu0 %v7840_v57  ;;  %4906 = vmatprep.subr.bf16.mxu1 %v7760_v28  ;;  %v6580_v44 = vpop.permute.xlu0 %1859 }
 0x141   :  { %4771 = vmatprep.subr.bf16.mxu0 %v7760_v28  ;;  %v1987_v33 = vand.u32 4294901760, %v1986_v21  ;;  %v7646_v21 = vand.u32 4294901760, %v6399_v17  ;;  %v2816_v48 = vsub.f32 %v6394_v31, %v7643_v49  ;;  %v7852_v31 = vld [vmem:[#allocation18_spill] sm:$0xff] }
 0x143   :  { %4908 = vmatpush3.bf16.msra.mxu1 %v4907_v32  ;;  %v1994_v32 = vand.u32 4294901760, %v1993_v15  ;;  %v2817_v49 = vand.u32 4294901760, %v2816_v48  ;;  %v7860_v48 = vld [vmem:[#allocation19_spill] sm:$0xff] }
 0x144   :  { %4773 = vmatpush3.bf16.msra.mxu0 %v7842_v41  ;;  %4909 = vmatprep.subr.bf16.mxu1 %v7760_v28 }
 0x145   :  { %4774 = vmatprep.subr.bf16.mxu0 %v7760_v28  ;;  %v6584_v15 = vpack.c.bf16 %v1994_v32, %v1987_v33  ;;  %v2823_v33 = vsub.f32 %v6399_v17, %v7646_v21  ;;  %v7861_v32 = vld [vmem:[#allocation35_spill] sm:$0xff] }
 0x146   :  { %4166 = vmatmul.mubr.f32.vlgmr.msra.gmra.mrb[0].mxu1 %v6243_v3 }
 0x147   :  { %4911 = vmatpush3.bf16.msra.mxu1 %v7846_v22  ;;  %4200 = vmatprep.mubr.msk.f32.mxu1 %vm5406_vm0, %v7758_v18  ;;  %7849 = vst [vmem:[#allocation13_spill] sm:$0xff] %v6584_v15  ;;  %v6599_v15 = vpop.permute.xlu1 %2691  ;;  %v6601_v22 = vpop.permute.xlu0 %2689  ;;  %v2824_v17 = vand.u32 4294901760, %v2823_v33  ;;  %v7862_v33 = vand.u32 4294901760, %v6489_v12 }
 0x148   :  { %4776 = vmatpush3.bf16.msra.mxu0 %v7845_v20  ;;  %4912 = vmatprep.subr.bf16.mxu1 %v7760_v28  ;;  %v7854_v20 = vand.u32 4294901760, %v6442_v29 }
 0x149   :  { %4777 = vmatprep.subr.bf16.mxu0 %v7760_v28 }
 0x14a   :  { %v6610_v38 = vsub.f32 %v6442_v29, %v7854_v20  ;;  %v7858_v29 = vand.u32 4294901760, %v5698_v53 }
 0x14b   :  { %4914 = vmatpush3.bf16.msra.mxu1 %v7848_v9  ;;  %v7856_v9 = vand.u32 4294901760, %v6444_v40 }
 0x14c   :  { %4779 = vmatpush3.bf16.msra.mxu0 %v7847_v63  ;;  %4915 = vmatprep.subr.bf16.mxu1 %v7760_v28  ;;  %v7851_v63 = vld [vmem:[#allocation33_spill] sm:$0xff]  ;;  %7855 = vst [vmem:[#allocation14_spill] sm:$0xff] %v6610_v38 }
 0x14d   :  { %4780 = vmatprep.subr.bf16.mxu0 %v7760_v28 }
 0x14f   :  { %4917 = vmatpush3.bf16.msra.mxu1 %v7851_v63  ;;  %v7853_v63 = vld [vmem:[#allocation34_spill] sm:$0xff] }
 0x150   :  { %4782 = vmatpush3.bf16.msra.mxu0 %v7850_v55  ;;  %4918 = vmatprep.subr.bf16.mxu1 %v7760_v28  ;;  %v6620_v55 = vsub.f32 %v6444_v40, %v7856_v9  ;;  %v6634_v9 = vsub.f32 %v6489_v12, %v7862_v33  ;;  %v7864_v33 = vand.u32 4294901760, %v6517_v50  ;;  %v7868_v40 = vand.u32 4294901760, %v6545_v27 }
 0x151   :  { %4783 = vmatprep.subr.bf16.mxu0 %v7760_v28 }
 0x152   :  { %7857 = vst [vmem:[#allocation60_spill] sm:$0xff] %v6620_v55  ;;  %v6653_v12 = vsub.f32 %v6517_v50, %v7864_v33  ;;  %v7869_v33 = vand.u32 4294901760, %v6547_v24 }
 0x153   :  { %4920 = vmatpush3.bf16.msra.mxu1 %v7853_v63  ;;  %v7863_v63 = vand.u32 4294901760, %v6491_v26 }
 0x154   :  { %4785 = vmatpush3.bf16.msra.mxu0 %v7852_v31  ;;  %4921 = vmatprep.subr.bf16.mxu1 %v7760_v28  ;;  %v7859_v31 = vand.u32 4294901760, %v5703_v54  ;;  %v7866_v54 = vand.u32 4294901760, %v6532_v6  ;;  %v6674_v50 = vsub.f32 %v6547_v24, %v7869_v33 }
 0x155   :  { %4786 = vmatprep.subr.bf16.mxu0 %v7760_v28  ;;  %v6639_v20 = vsub.f32 %v6491_v26, %v7863_v63  ;;  %v7865_v63 = vand.u32 4294901760, %v6519_v2 }
 0x156   :  { %v4790_v58 = vpack.c.bf16 %v7859_v31, %v7858_v29  ;;  %v6643_v31 = vpop.permute.xlu1 %1865  ;;  %v6645_v29 = vpop.permute.xlu0 %1863  ;;  %v6663_v26 = vsub.f32 %v6532_v6, %v7866_v54  ;;  %v7872_v54 = vand.u32 4294901760, %v5727_v4  ;;  %v7873_v6 = vand.u32 4294901760, %v5732_v7 }
 0x157   :  { %4923 = vmatpush3.bf16.msra.mxu1 %v7861_v32  ;;  %v6658_v53 = vsub.f32 %v6519_v2, %v7865_v63  ;;  %v6669_v32 = vsub.f32 %v6545_v27, %v7868_v40  ;;  %v7871_v63 = vand.u32 4294901760, %v6137_v8  ;;  %v7874_v2 = vand.u32 4294901760, %v6534_v34 }
 0x158   :  { %4788 = vmatpush3.bf16.msra.mxu0 %v7860_v48  ;;  %4924 = vmatprep.subr.bf16.mxu1 %v7760_v28  ;;  %7867 = vst [vmem:[#allocation61_spill] sm:$0xff] %v6663_v26  ;;  %v6676_v48 = vpack.c.bf16 %v2824_v17, %v2817_v49  ;;  %v4793_v21 = vpack.c.bf16 %v7873_v6, %v7872_v54  ;;  %v7660_v27 = vand.u32 4294901760, %v6578_v10  ;;  %v7876_v17 = vld [vmem:[#allocation36_spill] sm:$0xff]  ;;  %v7877_v8 = vand.u32 4294901760, %v5755_v61 }
 0x159   :  { %4789 = vmatprep.subr.bf16.mxu0 %v7760_v28  ;;  %v6687_v40 = vsub.f32 %v6534_v34, %v7874_v2  ;;  %v7878_v49 = vand.u32 4294901760, %v5760_v62  ;;  %v7879_v6 = vand.u32 4294901760, %v6564_v37  ;;  %v7881_v2 = vand.u32 4294901760, %v6566_v51 }
 0x15a   :  { %7870 = vst [vmem:[#allocation62_spill] sm:$0xff] %v6676_v48  ;;  %v6719_v33 = vpop.permute.xlu1 %2695  ;;  %v6721_v61 = vpop.permute.xlu0 %2693  ;;  %v7886_v7 = vand.u32 4294901760, %v6610_v38  ;;  %v7888_v48 = vld [vmem:[#allocation37_spill] sm:$0xff] }
 0x15b   :  { %3991 = vmatmul.mubr.f32.vlgmr.msra.gmra.mrb[0].mxu0 %v7871_v63  ;;  %7875 = vst [vmem:[#allocation63_spill] sm:$0xff] %v6687_v40  ;;  %4926 = vmatpush3.bf16.msra.mxu1 %v7876_v17  ;;  %v4796_v4 = vpack.c.bf16 %v7878_v49, %v7877_v8  ;;  %v6700_v63 = vsub.f32 %v6564_v37, %v7879_v6  ;;  %v7898_v62 = vand.u32 4294901760, %v6687_v40  ;;  %v7901_v37 = vand.u32 4294901760, %v6599_v15 }
 0x15c   :  { %4791 = vmatpush3.bf16.msra.mxu0 %v4790_v58  ;;  %v6705_v54 = vsub.f32 %v6566_v51, %v7881_v2  ;;  %4927 = vmatprep.subr.bf16.mxu1 %v7760_v28  ;;  %v6727_v8 = vsub.f32 %v6578_v10, %v7660_v27  ;;  %v7883_v58 = vand.u32 4294901760, %v6580_v44  ;;  %v7885_v2 = vand.u32 4294901760, %v6620_v55 }
 0x15d   :  { %7880 = vst [vmem:[#allocation36_spill] sm:$0xff] %v6700_v63  ;;  %4792 = vmatprep.subr.bf16.mxu0 %v7760_v28  ;;  %4025 = vmatprep.mubr.msk.f32.mxu0 %vm5406_vm0, %v7758_v18  ;;  %v7889_v27 = vand.u32 4294901760, %v6658_v53  ;;  %v7890_v51 = vand.u32 4294901760, %v6653_v12  ;;  %v7893_v55 = vand.u32 4294901760, %v6669_v32 }
 0x15e   :  { %7882 = vst [vmem:[#allocation64_spill] sm:$0xff] %v6705_v54  ;;  %v6732_v49 = vsub.f32 %v6580_v44, %v7883_v58  ;;  %v6738_v6 = vpack.c.bf16 %v7886_v7, %v7885_v2  ;;  %v7892_v58 = vand.u32 4294901760, %v6674_v50  ;;  %v7896_v7 = vand.u32 4294901760, %v6634_v9  ;;  %v6794_v40 = vpop.permute.xlu1 %1869 }
 0x15f   :  { %4929 = vmatpush3.bf16.msra.mxu1 %v7888_v48  ;;  %v6747_v34 = vpack.c.bf16 %v7890_v51, %v7889_v27  ;;  %v7899_v51 = vand.u32 4294901760, %v6663_v26  ;;  %v7972_v26 = vld [vmem:[#allocation43_spill] sm:$0xff] }
 0x160   :  { %7884 = vst [vmem:[#allocation65_spill] sm:$0xff] %v6732_v49  ;;  %7887 = vst [vmem:[#allocation66_spill] sm:$0xff] %v6738_v6  ;;  %4794 = vmatpush3.bf16.msra.mxu0 %v4793_v21  ;;  %v6753_v38 = vpack.c.bf16 %v7893_v55, %v7892_v58  ;;  %4930 = vmatprep.subr.bf16.mxu1 %v7760_v28  ;;  %v7895_v21 = vand.u32 4294901760, %v6639_v20  ;;  %v6772_v55 = vsub.f32 %v6599_v15, %v7901_v37 }
 0x161   :  { %7891 = vst [vmem:[#allocation37_spill] sm:$0xff] %v6747_v34  ;;  %4795 = vmatprep.subr.bf16.mxu0 %v7760_v28  ;;  %v6767_v27 = vpack.c.bf16 %v7899_v51, %v7898_v62  ;;  %v7903_v58 = vand.u32 4294901760, %v6601_v22  ;;  %v7905_v34 = vand.u32 4294901760, %v6705_v54  ;;  %v7671_v62 = vand.u32 4294901760, %v6732_v49 }
 0x162   :  { %7894 = vst [vmem:[#allocation67_spill] sm:$0xff] %v6753_v38  ;;  %v6761_v2 = vpack.c.bf16 %v7896_v7, %v7895_v21  ;;  %7902 = vst [vmem:[#allocation70_spill] sm:$0xff] %v6772_v55  ;;  %v7906_v21 = vand.u32 4294901760, %v6700_v63  ;;  %v7673_v51 = vand.u32 4294901760, %v6643_v31  ;;  %v7674_v37 = vand.u32 4294901760, %v6645_v29 }
 0x163   :  { %7900 = vst [vmem:[#allocation69_spill] sm:$0xff] %v6767_v27  ;;  %v6777_v38 = vsub.f32 %v6601_v22, %v7903_v58  ;;  %v7908_v27 = vld [vmem:[#allocation38_spill] sm:$0xff]  ;;  %v7909_v58 = vand.u32 4294901760, %v7808_v16  ;;  %v7910_v6 = vand.u32 4294901760, %v5782_v45  ;;  %v7912_v45 = vand.u32 4294901760, %v6243_v3 }
 0x164   :  { %7897 = vst [vmem:[#allocation68_spill] sm:$0xff] %v6761_v2  ;;  %v6783_v7 = vpack.c.bf16 %v7906_v21, %v7905_v34  ;;  %v7672_v2 = vand.u32 4294901760, %v6727_v8  ;;  %4797 = vmatpush3.bf16.msra.mxu0 %v4796_v4  ;;  %4932 = vmatpush3.bf16.msra.mxu1 %v7908_v27  ;;  %v6796_v34 = vpop.permute.xlu0 %1867  ;;  %v7915_v21 = vld [vmem:[#allocation31_spill] sm:$0xff]  ;;  %v7916_v3 = vand.u32 4294901760, %v7813_v52 }
 0x165   :  { %7904 = vst [vmem:[#allocation71_spill] sm:$0xff] %v6777_v38  ;;  %v4799_v54 = vpack.c.bf16 %v7910_v6, %v7909_v58  ;;  %4798 = vmatprep.subr.bf16.mxu0 %v7760_v28  ;;  %4933 = vmatprep.subr.bf16.mxu1 %v7760_v28  ;;  %v6813_v6 = vsub.f32 %v6643_v31, %v7673_v51  ;;  %v7918_v51 = vand.u32 4294901760, %v6777_v38 }
 0x166   :  { %7907 = vst [vmem:[#allocation72_spill] sm:$0xff] %v6783_v7  ;;  %v6804_v4 = vpack.c.bf16 %v7672_v2, %v7671_v62  ;;  %v6818_v58 = vsub.f32 %v6645_v29, %v7674_v37  ;;  %v7675_v62 = vand.u32 4294901760, %v6719_v33  ;;  %v7919_v37 = vand.u32 4294901760, %v6772_v55 }
 0x167   :  { %4201 = vmatmul.mubr.f32.vlgmr.msra.gmra.mrb[0].mxu1 %v7912_v45  ;;  %7913 = vst [vmem:[#allocation73_spill] sm:$0xff] %v6813_v6  ;;  %v7917_v45 = vand.u32 4294901760, %v7812_v25  ;;  %v7921_v2 = vand.u32 4294901760, %v6150_v56  ;;  %v6841_v25 = vpop.permute.xlu1 %2699  ;;  %v7924_v56 = vand.u32 4294901760, %v6721_v61 }
 0x168   :  { %7911 = vst [vmem:[#allocation38_spill] sm:$0xff] %v6804_v4  ;;  %7914 = vst [vmem:[#allocation74_spill] sm:$0xff] %v6818_v58  ;;  %4800 = vmatpush3.bf16.msra.mxu0 %v4799_v54  ;;  %4935 = vmatpush3.bf16.msra.mxu1 %v7915_v21  ;;  %v6833_v7 = vpack.c.bf16 %v7919_v37, %v7918_v51  ;;  %v7922_v54 = vand.u32 4294901760, %v6145_v13  ;;  %v6843_v52 = vpop.permute.xlu0 %2697  ;;  %v6850_v51 = vsub.f32 %v6719_v33, %v7675_v62 }
 0x169   :  { %v4802_v16 = vpack.c.bf16 %v7917_v45, %v7916_v3  ;;  %4801 = vmatprep.subr.bf16.mxu0 %v7760_v28  ;;  %4936 = vmatprep.subr.bf16.mxu1 %v7760_v28  ;;  %v7676_v45 = vand.u32 4294901760, %v6818_v58  ;;  %v6855_v13 = vsub.f32 %v6721_v61, %v7924_v56  ;;  %v7927_v37 = vand.u32 4294901760, %v7826_v35 }
 0x16a   :  { %7920 = vst [vmem:[#allocation31_spill] sm:$0xff] %v6833_v7  ;;  %v4937_v21 = vpack.c.bf16 %v7922_v54, %v7921_v2  ;;  %4235 = vmatprep.mubr.msk.f32.mxu1 %vm5406_vm0, %v7758_v18  ;;  %7923 = vst [vmem:[#allocation75_spill] sm:$0xff] %v6850_v51  ;;  %v7926_v2 = vand.u32 4294901760, %v7827_v46  ;;  %v7677_v3 = vand.u32 4294901760, %v6794_v40  ;;  %v7678_v62 = vand.u32 4294901760, %v6796_v34 }
 0x16b   :  { %7925 = vst [vmem:[#allocation76_spill] sm:$0xff] %v6855_v13  ;;  %v7928_v56 = vand.u32 4294901760, %v6813_v6 }
 0x16c   :  { %4803 = vmatpush3.bf16.msra.mxu0 %v4802_v16  ;;  %4938 = vmatpush3.bf16.msra.mxu1 %v4937_v21  ;;  %v4805_v54 = vpack.c.bf16 %v7927_v37, %v7926_v2  ;;  %v7679_v21 = vand.u32 4294901760, %v6855_v13  ;;  %v6878_v2 = vsub.f32 %v6794_v40, %v7677_v3  ;;  %v6883_v37 = vsub.f32 %v6796_v34, %v7678_v62  ;;  %v6890_v16 = vpop.permute.xlu1 %1873  ;;  %v6892_v35 = vpop.permute.xlu0 %1871 }
 0x16d   :  { %4804 = vmatprep.subr.bf16.mxu0 %v7760_v28  ;;  %4939 = vmatprep.subr.bf16.mxu1 %v7760_v28  ;;  %v6869_v7 = vpack.c.bf16 %v7928_v56, %v7676_v45  ;;  %v7932_v56 = vand.u32 4294901760, %v7830_v11  ;;  %v7933_v45 = vand.u32 4294901760, %v7829_v0  ;;  %v7934_v3 = vand.u32 4294901760, %v6850_v51 }
 0x16e   :  { %7930 = vst [vmem:[#allocation78_spill] sm:$0xff] %v6878_v2  ;;  %7931 = vst [vmem:[#allocation79_spill] sm:$0xff] %v6883_v37  ;;  %v7938_v0 = vand.u32 4294901760, %v6843_v52  ;;  %v7682_v62 = vand.u32 4294901760, %v6883_v37 }
 0x16f   :  { %7929 = vst [vmem:[#allocation77_spill] sm:$0xff] %v6869_v7  ;;  %v4808_v46 = vpack.c.bf16 %v7933_v45, %v7932_v56  ;;  %v7692_v56 = vand.u32 4294901760, %v6892_v35 }
 0x170   :  { %4806 = vmatpush3.bf16.msra.mxu0 %v4805_v54  ;;  %4941 = vmatpush3.bf16.msra.mxu1 %v6471_v59  ;;  %v6900_v54 = vpack.c.bf16 %v7934_v3, %v7679_v21  ;;  %v7936_v59 = vand.u32 4294901760, %v6841_v25  ;;  %v6910_v45 = vsub.f32 %v6843_v52, %v7938_v0  ;;  %v7940_v3 = vand.u32 4294901760, %v7835_v47  ;;  %v6919_v7 = vpop.permute.xlu1 %2703 }
 0x171   :  { %4807 = vmatprep.subr.bf16.mxu0 %v7760_v28  ;;  %4942 = vmatprep.subr.bf16.mxu1 %v7760_v28  ;;  %v7941_v21 = vand.u32 4294901760, %v7834_v30  ;;  %v7683_v0 = vand.u32 4294901760, %v6890_v16  ;;  %v7686_v4 = vand.u32 4294901760, %v6919_v7 }
 0x172   :  { %7935 = vst [vmem:[#allocation80_spill] sm:$0xff] %v6900_v54  ;;  %v6905_v11 = vsub.f32 %v6841_v25, %v7936_v59  ;;  %7939 = vst [vmem:[#allocation82_spill] sm:$0xff] %v6910_v45  ;;  %v6921_v59 = vpop.permute.xlu0 %2701 }
 0x173   :  { %v4811_v54 = vpack.c.bf16 %v7941_v21, %v7940_v3  ;;  %v6938_v21 = vsub.f32 %v6890_v16, %v7683_v0  ;;  %v6943_v3 = vsub.f32 %v6892_v35, %v7692_v56  ;;  %v7691_v13 = vand.u32 4294901760, %v6921_v59 }
 0x174   :  { %7937 = vst [vmem:[#allocation81_spill] sm:$0xff] %v6905_v11  ;;  %4809 = vmatpush3.bf16.msra.mxu0 %v4808_v46  ;;  %4944 = vmatpush3.bf16.msra.mxu1 %v6479_v42  ;;  %v7942_v42 = vand.u32 4294901760, %v6878_v2  ;;  %v7685_v30 = vand.u32 4294901760, %v6905_v11  ;;  %v7684_v46 = vand.u32 4294901760, %v6910_v45  ;;  %v7962_v45 = vld [vmem:[#allocation54_spill] sm:$0xff] }
 0x175   :  { %4810 = vmatprep.subr.bf16.mxu0 %v7760_v28  ;;  %4945 = vmatprep.subr.bf16.mxu1 %v7760_v28  ;;  %7944 = vst [vmem:[#allocation84_spill] sm:$0xff] %v6938_v21  ;;  %7945 = vst [vmem:[#allocation85_spill] sm:$0xff] %v6943_v3  ;;  %v7687_v0 = vand.u32 4294901760, %v6943_v3  ;;  %v7966_v3 = vld [vmem:[#allocation59_spill] sm:$0xff] }
 0x176   :  { %v6931_v47 = vpack.c.bf16 %v7942_v42, %v7682_v62  ;;  %v6954_v42 = vpack.c.bf16 %v7685_v30, %v7684_v46  ;;  %v7688_v62 = vand.u32 4294901760, %v6938_v21  ;;  %v7967_v21 = vld [vmem:[#allocation20_spill] sm:$0xff] }
 0x178   :  { %7943 = vst [vmem:[#allocation83_spill] sm:$0xff] %v6931_v47  ;;  %4812 = vmatpush3.bf16.msra.mxu0 %v4811_v54  ;;  %4947 = vmatpush3.bf16.msra.mxu1 %v6487_v36  ;;  %7946 = vst [vmem:[#allocation86_spill] sm:$0xff] %v6954_v42  ;;  %v6962_v36 = vsub.f32 %v6919_v7, %v7686_v4  ;;  %v6967_v54 = vsub.f32 %v6921_v59, %v7691_v13 }
 0x179   :  { %4813 = vmatprep.subr.bf16.mxu0 %v7760_v28  ;;  %4948 = vmatprep.subr.bf16.mxu1 %v7760_v28  ;;  %v6977_v46 = vpack.c.bf16 %v7688_v62, %v7687_v0  ;;  %v7953_v62 = vld [vmem:[#allocation41_spill] sm:$0xff] }
 0x17a   :  { %7947 = vst [vmem:[#allocation87_spill] sm:$0xff] %v6962_v36  ;;  %7948 = vst [vmem:[#allocation88_spill] sm:$0xff] %v6967_v54  ;;  %v7690_v30 = vand.u32 4294901760, %v6962_v36  ;;  %v7689_v4 = vand.u32 4294901760, %v6967_v54  ;;  %v7961_v54 = vld [vmem:[#allocation49_spill] sm:$0xff] }
 0x17b   :  { %4026 = vmatmul.mubr.f32.vlgmr.msra.gmra.mrb[0].mxu0 %v6122_v5  ;;  %7949 = vst [vmem:[#allocation89_spill] sm:$0xff] %v6977_v46  ;;  %v7960_v46 = vld [vmem:[#allocation45_spill] sm:$0xff] }
 0x17c   :  { %4815 = vmatpush3.bf16.msra.mxu0 %v7839_v14  ;;  %4950 = vmatpush3.bf16.msra.mxu1 %v6497_v60  ;;  %v7950_v60 = vld [vmem:[#allocation29_spill] sm:$0xff]  ;;  %v7951_v14 = vld [vmem:[#allocation40_spill] sm:$0xff]  ;;  %v6993_v0 = vpack.c.bf16 %v7690_v30, %v7689_v4  ;;  %v7957_v4 = vld [vmem:[#allocation30_spill] sm:$0xff] }
 0x17d   :  { %4816 = vmatprep.subr.bf16.mxu0 %v7760_v28  ;;  %4951 = vmatprep.subr.bf16.mxu1 %v7760_v28  ;;  %vm1757_vm11 = vcmp.eq.s32.totalorder %v7951_v14, %v7950_v60  ;;  %vm1758_vm14 = vcmp.eq.s32.totalorder %v7953_v62, %v7950_v60  ;;  %vm1759_vm1 = vcmp.eq.s32.totalorder %v6316_v19, %v7950_v60  ;;  %v7954_v62 = vld [vmem:[#allocation39_spill] sm:$0xff] }
 0x17e   :  { %4060 = vmatprep.mubr.msk.f32.mxu0 %vm5406_vm0, %v7758_v18  ;;  %7952 = vst [vmem:[#allocation29_spill] sm:$0xff] %v6993_v0  ;;  %vm1760_vm2 = vcmp.eq.s32.totalorder %v6387_v1, %v7950_v60  ;;  %vm1761_vm3 = vcmp.eq.s32.totalorder %v6414_v23, %v7950_v60  ;;  %v7956_v19 = vld [vmem:[#allocation15_spill] sm:$0xff]  ;;  %vm2587_vm10 = vcmp.eq.s32.totalorder %v7960_v46, %v7950_v60  ;;  %v7964_v46 = vld [vmem:[#allocation17_spill] sm:$0xff] }
 0x17f   :  { %v3432_v13 = vsel %vm1760_vm2, 1.0, %v7758_v18  ;;  %v3433_v1 = vsel %vm1761_vm3, 1.0, %v7758_v18  ;;  %vm2588_vm12 = vcmp.eq.s32.totalorder %v7961_v54, %v7950_v60  ;;  %vm2589_vm13 = vcmp.eq.s32.totalorder %v7962_v45, %v7950_v60 }
 0x180   :  { %4818 = vmatpush3.bf16.msra.mxu0 %v7840_v57  ;;  %4953 = vmatpush3.bf16.msra.mxu1 %v6503_v43  ;;  %v3429_v57 = vsel %vm1757_vm11, 1.0, %v7758_v18  ;;  %v3430_v43 = vsel %vm1758_vm14, 1.0, %v7758_v18  ;;  %v1809_v0 = vrot.slane %v3432_v13, 4  ;;  %v1815_v47 = vrot.slane %v3433_v1, 4 }
 0x181   :  { %4819 = vmatprep.subr.bf16.mxu0 %v7760_v28  ;;  %4954 = vmatprep.subr.bf16.mxu1 %v7760_v28  ;;  %v1791_v14 = vrot.slane %v3429_v57, 4  ;;  %v1797_v30 = vrot.slane %v3430_v43, 4  ;;  %v3440_v51 = vsel %vm2588_vm12, 1.0, %v7758_v18  ;;  %vm2591_vm14 = vcmp.eq.s32.totalorder %v7966_v3, %v7950_v60  ;;  %v7968_v3 = vld [vmem:[#allocation18_spill] sm:$0xff] }
 0x182   :  { %v1816_v54 = vadd.f32 %v3433_v1, %v1815_v47  ;;  %v3443_v47 = vsel %vm2591_vm14, 1.0, %v7758_v18  ;;  %v7969_v1 = vld [vmem:[#allocation34_spill] sm:$0xff] }
 0x183   :  { %v1792_v23 = vadd.f32 %v3429_v57, %v1791_v14  ;;  %v1798_v42 = vadd.f32 %v3430_v43, %v1797_v30  ;;  %v1810_v30 = vadd.f32 %v3432_v13, %v1809_v0  ;;  %v7963_v43 = vld [vmem:[#allocation56_spill] sm:$0xff]  ;;  %v3441_v13 = vsel %vm2589_vm13, 1.0, %v7758_v18 }
 0x184   :  { %4821 = vmatpush3.bf16.msra.mxu0 %v7842_v41  ;;  %4956 = vmatpush3.bf16.msra.mxu1 %v6505_v39  ;;  %v3431_v39 = vsel %vm1759_vm1, 1.0, %v7758_v18  ;;  %v7955_v41 = vld [vmem:[#allocation55_spill] sm:$0xff]  ;;  %vm2590_vm11 = vcmp.eq.s32.totalorder %v7963_v43, %v7950_v60  ;;  %vm2592_vm1 = vcmp.eq.s32.totalorder %v7967_v21, %v7950_v60  ;;  %v1817_v55 = vrot.slane %v1816_v54, 2 }
 0x185   :  { %4822 = vmatprep.subr.bf16.mxu0 %v7760_v28  ;;  %4957 = vmatprep.subr.bf16.mxu1 %v7760_v28  ;;  %vm1762_vm9 = vcmp.eq.s32.totalorder %v7955_v41, %v7950_v60  ;;  %v1803_v56 = vrot.slane %v3431_v39, 4  ;;  %v1793_v14 = vrot.slane %v1792_v23, 2  ;;  %v1799_v11 = vrot.slane %v1798_v42, 2 }
 0x186   :  { %v3434_v41 = vsel %vm1762_vm9, 1.0, %v7758_v18  ;;  %v3442_v43 = vsel %vm2590_vm11, 1.0, %v7758_v18  ;;  %v2633_v37 = vrot.slane %v3441_v13, 4  ;;  %v3444_v2 = vsel %vm2592_vm1, 1.0, %v7758_v18 }
 0x187   :  { %4236 = vmatmul.mubr.f32.vlgmr.msra.gmra.mrb[0].mxu1 %v7954_v62  ;;  %v1821_v57 = vrot.slane %v3434_v41, 4  ;;  %v1804_v36 = vadd.f32 %v3431_v39, %v1803_v56  ;;  %v1794_v56 = vadd.f32 %v1793_v14, %v1792_v23  ;;  %v1800_v38 = vadd.f32 %v1799_v11, %v1798_v42 }
 0x188   :  { %4824 = vmatpush3.bf16.msra.mxu0 %v7956_v19  ;;  %4959 = vmatpush3.bf16.msra.mxu1 %v7957_v4  ;;  %v7958_v19 = vld [vmem:[#allocation16_spill] sm:$0xff]  ;;  %v2645_v21 = vrot.slane %v3443_v47, 4  ;;  %v1818_v42 = vadd.f32 %v1817_v55, %v1816_v54  ;;  %v2634_v6 = vadd.f32 %v3441_v13, %v2633_v37 }
 0x189   :  { %4825 = vmatprep.subr.bf16.mxu0 %v7760_v28  ;;  %4960 = vmatprep.subr.bf16.mxu1 %v7760_v28  ;;  %v7959_v4 = vld [vmem:[#allocation32_spill] sm:$0xff]  ;;  %v1822_v45 = vadd.f32 %v3434_v41, %v1821_v57  ;;  %v1805_v0 = vrot.slane %v1804_v36, 2  ;;  %v2639_v41 = vrot.slane %v3442_v43, 4  ;;  %v1795_v60 = vrot.slane %v1794_v56, 1 }
 0x18a   :  { %4270 = vmatprep.mubr.msk.f32.mxu1 %vm5406_vm0, %v7758_v18  ;;  %v1801_v11 = vrot.slane %v1800_v38, 1  ;;  %v1819_v13 = vrot.slane %v1818_v42, 1 }
 0x18b   :  { %v1823_v23 = vrot.slane %v1822_v45, 2  ;;  %v1806_v57 = vadd.f32 %v1805_v0, %v1804_v36  ;;  %v7973_v36 = vand.u32 4294901760, %v7972_v26  ;;  %v1796_v55 = vadd.f32 %v1795_v60, %v1794_v56 }
 0x18c   :  { %4827 = vmatpush3.bf16.msra.mxu0 %v7958_v19  ;;  %4962 = vmatpush3.bf16.msra.mxu1 %v7959_v4  ;;  %v3439_v19 = vsel %vm2587_vm10, 1.0, %v7758_v18  ;;  %v7965_v4 = vld [vmem:[#allocation33_spill] sm:$0xff]  ;;  %v1802_v26 = vadd.f32 %v1801_v11, %v1800_v38  ;;  %v7980_v11 = vld [vmem:[#allocation44_spill] sm:$0xff] }
 0x18d   :  { %4828 = vmatprep.subr.bf16.mxu0 %v7760_v28  ;;  %4963 = vmatprep.subr.bf16.mxu1 %v7760_v28  ;;  %v2621_v39 = vrot.slane %v3439_v19, 4  ;;  %v1824_v49 = vadd.f32 %v1823_v23, %v1822_v45  ;;  %v7976_v23 = vld [vmem:[#allocation58_spill] sm:$0xff] }
 0x18f   :  { %v2622_v14 = vadd.f32 %v3439_v19, %v2621_v39  ;;  %v7974_v19 = vld [vmem:[#allocation42_spill] sm:$0xff]  ;;  %v1825_v45 = vrot.slane %v1824_v49, 1 }
 0x190   :  { %4830 = vmatpush3.bf16.msra.mxu0 %v7964_v46  ;;  %4965 = vmatpush3.bf16.msra.mxu1 %v7965_v4  ;;  %v2627_v46 = vrot.slane %v3440_v51, 4  ;;  %v1811_v4 = vrot.slane %v1810_v30, 2  ;;  %v7975_v0 = vand.u32 4294901760, %v7974_v19 }
 0x191   :  { %4831 = vmatprep.subr.bf16.mxu0 %v7760_v28  ;;  %4966 = vmatprep.subr.bf16.mxu1 %v7760_v28 }
 0x192   :  { %v2628_v63 = vadd.f32 %v3440_v51, %v2627_v46  ;;  %v1812_v58 = vadd.f32 %v1811_v4, %v1810_v30  ;;  %v7060_v39 = vpack.c.bf16 %v7975_v0, %v7973_v36  ;;  %v2640_v51 = vadd.f32 %v3442_v43, %v2639_v41  ;;  %v7978_v41 = vld [vmem:[#allocation57_spill] sm:$0xff] }
 0x193   :  { %v2651_v30 = vrot.slane %v3444_v2, 4  ;;  %v1807_v46 = vrot.slane %v1806_v57, 1  ;;  %v2623_v4 = vrot.slane %v2622_v14, 2  ;;  %v1836_v36 = vsel %vm202_vm15, %v1796_v55, %v7980_v11 }
 0x194   :  { %4833 = vmatpush3.bf16.msra.mxu0 %v7968_v3  ;;  %4968 = vmatpush3.bf16.msra.mxu1 %v7969_v1  ;;  %v7970_v3 = vld [vmem:[#allocation19_spill] sm:$0xff]  ;;  %v2629_v37 = vrot.slane %v2628_v63, 2  ;;  %v1813_v54 = vrot.slane %v1812_v58, 1  ;;  %v2641_v43 = vrot.slane %v2640_v51, 2 }
 0x195   :  { %4834 = vmatprep.subr.bf16.mxu0 %v7760_v28  ;;  %4969 = vmatprep.subr.bf16.mxu1 %v7760_v28  ;;  %v7971_v1 = vld [vmem:[#allocation35_spill] sm:$0xff]  ;;  %v2624_v38 = vadd.f32 %v2623_v4, %v2622_v14  ;;  %v7983_v4 = vld [vmem:[#allocation24_spill] sm:$0xff] }
 0x196   :  { %v2630_v19 = vadd.f32 %v2629_v37, %v2628_v63  ;;  %v1814_v0 = vadd.f32 %v1813_v54, %v1812_v58  ;;  %v7984_v63 = vand.u32 4294901760, %v7983_v4  ;;  %v7998_v4 = vld [vmem:[#allocation50_spill] sm:$0xff] }
 0x198   :  { %4836 = vmatpush3.bf16.msra.mxu0 %v7970_v3  ;;  %4971 = vmatpush3.bf16.msra.mxu1 %v7971_v1  ;;  %v2646_v3 = vadd.f32 %v3443_v47, %v2645_v21  ;;  %v2635_v1 = vrot.slane %v2634_v6, 2  ;;  %v7977_v47 = vand.u32 4294901760, %v7976_v23  ;;  %v2652_v21 = vadd.f32 %v3444_v2, %v2651_v30  ;;  %v7981_v30 = vld [vmem:[#allocation23_spill] sm:$0xff] }
 0x199   :  { %4981 = vmatprep.subr.bf16.mxu0 %v7760_v28  ;;  %4972 = vmatprep.subr.bf16.mxu1 %v7760_v28  ;;  %v1837_v23 = vsel %vm204_vm4, %v1802_v26, %v1836_v36  ;;  %v1826_v2 = vadd.f32 %v1825_v45, %v1824_v49  ;;  %v2631_v54 = vrot.slane %v2630_v19, 1  ;;  %v7985_v49 = vld [vmem:[#allocation48_spill] sm:$0xff] }
 0x19a   :  { %v2647_v60 = vrot.slane %v2646_v3, 2  ;;  %v2653_v14 = vrot.slane %v2652_v21, 2 }
 0x19b   :  { %4061 = vmatmul.mubr.f32.vlgmr.msra.gmra.mrb[0].mxu0 %v6122_v5  ;;  %v7979_v5 = vand.u32 4294901760, %v7978_v41  ;;  %v2636_v41 = vadd.f32 %v2635_v1, %v2634_v6 }
 0x19c   :  { %4983 = vmatpush3.bf16.msra.mxu0 %v7060_v39  ;;  %4974 = vmatpush3.bf16.msra.mxu1 %v7876_v17  ;;  %v1808_v17 = vadd.f32 %v1807_v46, %v1806_v57  ;;  %v2642_v57 = vadd.f32 %v2641_v43, %v2640_v51  ;;  %v7982_v46 = vand.u32 4294901760, %v7981_v30  ;;  %v2648_v37 = vadd.f32 %v2647_v60, %v2646_v3  ;;  %v7987_v51 = vld [vmem:[#allocation51_spill] sm:$0xff] }
 0x19d   :  { %4984 = vmatprep.subr.bf16.mxu0 %v7760_v28  ;;  %4975 = vmatprep.subr.bf16.mxu1 %v7760_v28  ;;  %v7071_v56 = vpack.c.bf16 %v7979_v5, %v7977_v47  ;;  %v1820_v47 = vadd.f32 %v1819_v13, %v1818_v42  ;;  %v7986_v42 = vand.u32 4294901760, %v7985_v49  ;;  %v7988_v26 = vand.u32 4294901760, %v7987_v51  ;;  %v8003_v51 = vld [vmem:[#allocation26_spill] sm:$0xff] }
 0x19e   :  { %4305 = vmatprep.mubr.msk.f32.mxu0 %vm5406_vm0, %v7758_v18  ;;  %v7086_v58 = vpack.c.bf16 %v7984_v63, %v7982_v46  ;;  %v1838_v55 = vsel %vm206_vm5, %v1808_v17, %v1837_v23  ;;  %v2637_v45 = vrot.slane %v2636_v41, 1  ;;  %v2643_v43 = vrot.slane %v2642_v57, 1 }
 0x19f   :  { %v1839_v6 = vsel %vm208_vm6, %v1814_v0, %v1838_v55  ;;  %v7096_v13 = vpack.c.bf16 %v7988_v26, %v7986_v42  ;;  %v2654_v5 = vadd.f32 %v2653_v14, %v2652_v21  ;;  %v7989_v17 = vand.u32 4294901760, %v6547_v24  ;;  %v8001_v42 = vld [vmem:[#allocation25_spill] sm:$0xff] }
 0x1a0   :  { %4986 = vmatpush3.bf16.msra.mxu0 %v7071_v56  ;;  %4977 = vmatpush3.bf16.msra.mxu1 %v7888_v48  ;;  %v2625_v48 = vrot.slane %v2624_v38, 1  ;;  %v1840_v1 = vsel %vm210_vm7, %v1820_v47, %v1839_v6  ;;  %v2649_v0 = vrot.slane %v2648_v37, 1  ;;  %v2632_v23 = vadd.f32 %v2631_v54, %v2630_v19  ;;  %v7994_v19 = vld [vmem:[#allocation21_spill] sm:$0xff] }
 0x1a1   :  { %4987 = vmatprep.subr.bf16.mxu0 %v7760_v28  ;;  %4978 = vmatprep.subr.bf16.mxu1 %v7760_v28  ;;  %v1841_v3 = vsel %vm212_vm8, %v1826_v2, %v1840_v1  ;;  %v7992_v47 = vand.u32 4294901760, %v6580_v44  ;;  %v7993_v30 = vand.u32 4294901760, %v6578_v10  ;;  %v2638_v24 = vadd.f32 %v2637_v45, %v2636_v41  ;;  %v7996_v44 = vld [vmem:[#allocation22_spill] sm:$0xff] }
 0x1a2   :  { %v2626_v36 = vadd.f32 %v2625_v48, %v2624_v38  ;;  %v7117_v21 = vand.u32 4294901760, %v1841_v3  ;;  %v2644_v38 = vadd.f32 %v2643_v43, %v2642_v57  ;;  %v7995_v2 = vand.u32 4294901760, %v7994_v19  ;;  %v8015_v19 = vld [vmem:[#allocation60_spill] sm:$0xff] }
 0x1a3   :  { %v7113_v46 = vpack.c.bf16 %v7993_v30, %v7992_v47  ;;  %v7997_v14 = vand.u32 4294901760, %v7996_v44  ;;  %v2650_v63 = vadd.f32 %v2649_v0, %v2648_v37  ;;  %v7999_v48 = vand.u32 4294901760, %v6645_v29  ;;  %v8009_v0 = vld [vmem:[#allocation27_spill] sm:$0xff] }
 0x1a4   :  { %4989 = vmatpush3.bf16.msra.mxu0 %v7086_v58  ;;  %4980 = vmatpush3.bf16.msra.mxu1 %v7908_v27  ;;  %v7990_v27 = vld [vmem:[#allocation28_spill] sm:$0xff]  ;;  %v2666_v41 = vsel %vm202_vm15, %v2626_v36, %v7998_v4  ;;  %v8000_v57 = vand.u32 4294901760, %v6643_v31  ;;  %v7142_v49 = vsub.f32 %v1841_v3, %v7117_v21  ;;  %v8002_v31 = vand.u32 4294901760, %v8001_v42 }
 0x1a5   :  { %4990 = vmatprep.subr.bf16.mxu0 %v7760_v28  ;;  %5125 = vmatprep.subr.bf16.mxu1 %v7760_v28  ;;  %v7991_v60 = vand.u32 4294901760, %v7990_v27  ;;  %v7125_v10 = vpack.c.bf16 %v7997_v14, %v7995_v2  ;;  %v2667_v55 = vsel %vm204_vm4, %v2632_v23, %v2666_v41  ;;  %v8004_v26 = vand.u32 4294901760, %v8003_v51  ;;  %v8025_v51 = vld [vmem:[#allocation13_spill] sm:$0xff] }
 0x1a6   :  { %v7136_v54 = vpack.c.bf16 %v8000_v57, %v7999_v48  ;;  %v2668_v6 = vsel %vm206_vm5, %v2638_v24, %v2667_v55  ;;  %v8005_v43 = vand.u32 4294901760, %v6796_v34  ;;  %v8006_v3 = vand.u32 4294901760, %v6794_v40 }
 0x1a7   :  { %v7106_v11 = vpack.c.bf16 %v7991_v60, %v7989_v17  ;;  %4271 = vmatmul.mubr.f32.vlgmr.msra.gmra.mrb[0].mxu1 %v7954_v62  ;;  %v2655_v62 = vrot.slane %v2654_v5, 1  ;;  %v2669_v37 = vsel %vm208_vm6, %v2644_v38, %v2668_v6  ;;  %v7151_v1 = vpack.c.bf16 %v8004_v26, %v8002_v31  ;;  %v8007_v60 = vld [vmem:[#allocation12_spill] sm:$0xff] }
 0x1a8   :  { %5127 = vmatpush3.bf16.msra.mxu1 %v7096_v13  ;;  %4515 = vmatprep.mubr.msk.f32.mxu1 %vm5406_vm0, %v7758_v18  ;;  %v2670_v45 = vsel %vm210_vm7, %v2650_v63, %v2669_v37  ;;  %v7158_v17 = vpack.c.bf16 %v8006_v3, %v8005_v43  ;;  %v8008_v36 = vand.u32 4294901760, %v8007_v60  ;;  %v8010_v34 = vand.u32 4294901760, %v8009_v0 }
 0x1a9   :  { %4992 = vmatpush3.bf16.msra.mxu0 %v7106_v11  ;;  %5128 = vmatprep.subr.bf16.mxu1 %v7760_v28  ;;  %v2656_v29 = vadd.f32 %v2655_v62, %v2654_v5  ;;  %v7726_v5 = vand.u32 4294901760, %v7142_v49  ;;  %v8011_v40 = vand.u32 4294901760, %v6892_v35  ;;  %v8012_v47 = vand.u32 4294901760, %v6890_v16  ;;  %v8013_v62 = vld [vmem:[#allocation14_spill] sm:$0xff] }
 0x1aa   :  { %4993 = vmatprep.subr.bf16.mxu0 %v7760_v28  ;;  %v7170_v23 = vpack.c.bf16 %v8010_v34, %v8008_v36  ;;  %v8014_v35 = vand.u32 4294901760, %v8013_v62  ;;  %v8016_v2 = vand.u32 4294901760, %v8015_v19  ;;  %v8017_v14 = vand.u32 4294901760, %v6601_v22 }
 0x1ab   :  { %v2671_v27 = vsel %vm212_vm8, %v2656_v29, %v2670_v45  ;;  %v7176_v30 = vpack.c.bf16 %v8012_v47, %v8011_v40  ;;  %v1975_v38 = vsub.f32 %v7142_v49, %v7726_v5  ;;  %v8018_v4 = vand.u32 4294901760, %v6599_v15 }
 0x1ac   :  { %5130 = vmatpush3.bf16.msra.mxu1 %v7125_v10  ;;  %v7180_v24 = vand.u32 4294901760, %v2671_v27  ;;  %v2007_v16 = vsub.f32 %v8013_v62, %v8014_v35  ;;  %v2000_v44 = vsub.f32 %v8015_v19, %v8016_v2  ;;  %v8020_v63 = vand.u32 4294901760, %v6653_v12 }
 0x1ad   :  { %4995 = vmatpush3.bf16.msra.mxu0 %v7113_v46  ;;  %5131 = vmatprep.subr.bf16.mxu1 %v7760_v28  ;;  %v7197_v41 = vpack.c.bf16 %v8018_v4, %v8017_v14  ;;  %v8021_v48 = vand.u32 4294901760, %v6658_v53  ;;  %v1976_v6 = vand.u32 4294901760, %v1975_v38  ;;  %v8022_v29 = vand.u32 4294901760, %v6721_v61 }
 0x1ae   :  { %4996 = vmatprep.subr.bf16.mxu0 %v7760_v28  ;;  %v2021_v55 = vsub.f32 %v6653_v12, %v8020_v63  ;;  %v7210_v22 = vsub.f32 %v2671_v27, %v7180_v24  ;;  %v2008_v15 = vand.u32 4294901760, %v2007_v16  ;;  %v2001_v37 = vand.u32 4294901760, %v2000_v44 }
 0x1af   :  { %8019 = vst [vmem:[#allocation40_spill] sm:$0xff] %v7197_v41  ;;  %v2014_v57 = vsub.f32 %v6658_v53, %v8021_v48  ;;  %v8023_v42 = vand.u32 4294901760, %v6719_v33  ;;  %v8026_v3 = vand.u32 4294901760, %v6669_v32  ;;  %v8027_v33 = vand.u32 4294901760, %v6674_v50 }
 0x1b0   :  { %5133 = vmatpush3.bf16.msra.mxu1 %v7151_v1  ;;  %v2022_v26 = vand.u32 4294901760, %v2021_v55  ;;  %v7725_v43 = vand.u32 4294901760, %v7210_v22  ;;  %v8028_v60 = vand.u32 4294901760, %v6843_v52  ;;  %v8029_v36 = vand.u32 4294901760, %v6841_v25 }
 0x1b1   :  { %4998 = vmatpush3.bf16.msra.mxu0 %v7136_v54  ;;  %5134 = vmatprep.subr.bf16.mxu1 %v7760_v28  ;;  %v7216_v31 = vpack.c.bf16 %v8023_v42, %v8022_v29  ;;  %v2015_v45 = vand.u32 4294901760, %v2014_v57  ;;  %v2035_v61 = vsub.f32 %v6669_v32, %v8026_v3  ;;  %v2028_v27 = vsub.f32 %v6674_v50, %v8027_v33  ;;  %v8041_v42 = vld [vmem:[#allocation63_spill] sm:$0xff] }
 0x1b2   :  { %4999 = vmatprep.subr.bf16.mxu0 %v7760_v28  ;;  %v7233_v0 = vpack.c.bf16 %v8029_v36, %v8028_v60  ;;  %v5009_v34 = vpack.c.bf16 %v2008_v15, %v2001_v37  ;;  %v8031_v40 = vand.u32 4294901760, %v6634_v9  ;;  %v8032_v38 = vand.u32 4294901760, %v6639_v20  ;;  %v8039_v15 = vld [vmem:[#allocation61_spill] sm:$0xff]  ;;  %v8045_v36 = vld [vmem:[#allocation74_spill] sm:$0xff] }
 0x1b3   :  { %8024 = vst [vmem:[#allocation41_spill] sm:$0xff] %v7216_v31  ;;  %v8033_v16 = vand.u32 4294901760, %v6921_v59  ;;  %v8034_v52 = vand.u32 4294901760, %v6919_v7  ;;  %v8036_v25 = vand.u32 4294901760, %v6727_v8  ;;  %v2805_v14 = vsub.f32 %v7210_v22, %v7725_v43  ;;  %v8037_v7 = vld [vmem:[#allocation65_spill] sm:$0xff] }
 0x1b4   :  { %5136 = vmatpush3.bf16.msra.mxu1 %v7170_v23  ;;  %8030 = vst [vmem:[#allocation39_spill] sm:$0xff] %v7233_v0  ;;  %v2837_v47 = vsub.f32 %v6634_v9, %v8031_v40  ;;  %v2830_v35 = vsub.f32 %v6639_v20, %v8032_v38  ;;  %v2036_v59 = vand.u32 4294901760, %v2035_v61  ;;  %v2029_v4 = vand.u32 4294901760, %v2028_v27  ;;  %v8047_v38 = vld [vmem:[#allocation36_spill] sm:$0xff] }
 0x1b5   :  { %5001 = vmatpush3.bf16.msra.mxu0 %v7158_v17  ;;  %5137 = vmatprep.subr.bf16.mxu1 %v7760_v28  ;;  %v7247_v2 = vpack.c.bf16 %v8034_v52, %v8033_v16  ;;  %v2049_v44 = vsub.f32 %v6727_v8, %v8036_v25  ;;  %v8038_v63 = vand.u32 4294901760, %v8037_v7  ;;  %v5012_v48 = vpack.c.bf16 %v2022_v26, %v2015_v45  ;;  %v8043_v45 = vld [vmem:[#allocation73_spill] sm:$0xff]  ;;  %v8049_v52 = vld [vmem:[#allocation64_spill] sm:$0xff] }
 0x1b6   :  { %5002 = vmatprep.subr.bf16.mxu0 %v7760_v28  ;;  %v2838_v57 = vand.u32 4294901760, %v2837_v47  ;;  %v8040_v37 = vand.u32 4294901760, %v8039_v15  ;;  %v2806_v33 = vand.u32 4294901760, %v2805_v14  ;;  %v8044_v27 = vand.u32 4294901760, %v8043_v45  ;;  %v8051_v14 = vld [vmem:[#allocation62_spill] sm:$0xff] }
 0x1b7   :  { %8035 = vst [vmem:[#allocation55_spill] sm:$0xff] %v7247_v2  ;;  %v2042_v55 = vsub.f32 %v8037_v7, %v8038_v63  ;;  %v2050_v61 = vand.u32 4294901760, %v2049_v44  ;;  %v5015_v47 = vpack.c.bf16 %v2036_v59, %v2029_v4  ;;  %v8050_v25 = vand.u32 4294901760, %v8049_v52 }
 0x1b8   :  { %5139 = vmatpush3.bf16.msra.mxu1 %v7197_v41  ;;  %v2851_v29 = vsub.f32 %v8039_v15, %v8040_v37  ;;  %v2063_v60 = vsub.f32 %v8043_v45, %v8044_v27  ;;  %v8054_v27 = vld [vmem:[#allocation79_spill] sm:$0xff]  ;;  %vm3376_vm15 = vcmask 523264   ;;  %vm3378_vm4 = vcmask 785408  }
 0x1b9   :  { %5004 = vmatpush3.bf16.msra.mxu0 %v7176_v30  ;;  %5140 = vmatprep.subr.bf16.mxu1 %v7760_v28  ;;  %v2043_v26 = vand.u32 4294901760, %v2042_v55  ;;  %v2858_v44 = vsub.f32 %v8049_v52, %v8050_v25  ;;  %v8055_v59 = vand.u32 4294901760, %v8054_v27  ;;  %v8056_v25 = vld [vmem:[#allocation70_spill] sm:$0xff] }
 0x1ba   :  { %5005 = vmatprep.subr.bf16.mxu0 %v7760_v28  ;;  %v2852_v63 = vand.u32 4294901760, %v2851_v29 }
 0x1bb   :  { %v2070_v4 = vsub.f32 %v8054_v27, %v8055_v59  ;;  %v8058_v59 = vld [vmem:[#allocation71_spill] sm:$0xff] }
 0x1bc   :  { %4306 = vmatmul.mubr.f32.vlgmr.msra.gmra.mrb[2].mxu0 %v1976_v6  ;;  %5142 = vmatpush3.bf16.msra.mxu1 %v7216_v31  ;;  %v2831_v6 = vand.u32 4294901760, %v2830_v35  ;;  %v8048_v35 = vand.u32 4294901760, %v8047_v38  ;;  %v8059_v43 = vand.u32 4294901760, %v8058_v59 }
 0x1bd   :  { %5007 = vmatpush3.bf16.msra.mxu0 %v8025_v51  ;;  %5143 = vmatprep.subr.bf16.mxu1 %v7760_v28  ;;  %v8042_v51 = vand.u32 4294901760, %v8041_v42 }
 0x1be   :  { %5008 = vmatprep.subr.bf16.mxu0 %v7760_v28  ;;  %4340 = vmatprep.mubr.msk.f32.mxu0 %vm5406_vm0, %v7758_v18  ;;  %v2865_v16 = vsub.f32 %v8047_v38, %v8048_v35  ;;  %v5018_v35 = vpack.c.bf16 %v2050_v61, %v2043_v26  ;;  %v2872_v5 = vsub.f32 %v8058_v59, %v8059_v43  ;;  %v8062_v26 = vld [vmem:[#allocation85_spill] sm:$0xff] }
 0x1bf   :  { %v2844_v3 = vsub.f32 %v8041_v42, %v8042_v51 }
 0x1c0   :  { %5145 = vmatpush3.bf16.msra.mxu1 %v7233_v0  ;;  %v2866_v29 = vand.u32 4294901760, %v2865_v16  ;;  %v2873_v43 = vand.u32 4294901760, %v2872_v5  ;;  %v8066_v0 = vld [vmem:[#allocation76_spill] sm:$0xff]  ;;  %v8068_v5 = vld [vmem:[#allocation81_spill] sm:$0xff] }
 0x1c1   :  { %5010 = vmatpush3.bf16.msra.mxu0 %v5009_v34  ;;  %5146 = vmatprep.subr.bf16.mxu1 %v7760_v28  ;;  %v8046_v34 = vand.u32 4294901760, %v8045_v36  ;;  %v2845_v55 = vand.u32 4294901760, %v2844_v3  ;;  %v2859_v3 = vand.u32 4294901760, %v2858_v44  ;;  %v8067_v31 = vand.u32 4294901760, %v8066_v0 }
 0x1c2   :  { %5011 = vmatprep.subr.bf16.mxu0 %v7760_v28 }
 0x1c3   :  { %v2056_v40 = vsub.f32 %v8045_v36, %v8046_v34  ;;  %v2886_v41 = vsub.f32 %v8066_v0, %v8067_v31 }
 0x1c4   :  { %5148 = vmatpush3.bf16.msra.mxu1 %v7247_v2 }
 0x1c5   :  { %5013 = vmatpush3.bf16.msra.mxu0 %v5012_v48  ;;  %5149 = vmatprep.subr.bf16.mxu1 %v7760_v28  ;;  %v8052_v48 = vld [vmem:[#allocation78_spill] sm:$0xff]  ;;  %v2057_v34 = vand.u32 4294901760, %v2056_v40  ;;  %v8063_v40 = vand.u32 4294901760, %v8062_v26  ;;  %v2887_v31 = vand.u32 4294901760, %v2886_v41 }
 0x1c6   :  { %5014 = vmatprep.subr.bf16.mxu0 %v7760_v28  ;;  %v8053_v37 = vand.u32 4294901760, %v8052_v48 }
 0x1c7   :  { %4516 = vmatmul.mubr.f32.vlgmr.msra.gmra.mrb[2].mxu1 %v2806_v33  ;;  %v2064_v33 = vand.u32 4294901760, %v2063_v60  ;;  %v2071_v60 = vand.u32 4294901760, %v2070_v4  ;;  %v2084_v16 = vsub.f32 %v8062_v26, %v8063_v40 }
 0x1c8   :  { %5151 = vmatpush3.bf16.msra.mxu1 %v8051_v14  ;;  %v2077_v51 = vsub.f32 %v8052_v48, %v8053_v37  ;;  %4550 = vmatprep.mubr.msk.f32.mxu1 %vm5406_vm0, %v7758_v18  ;;  %v8057_v14 = vand.u32 4294901760, %v8056_v25 }
 0x1c9   :  { %5016 = vmatpush3.bf16.msra.mxu0 %v5015_v47  ;;  %5152 = vmatprep.subr.bf16.mxu1 %v7760_v28  ;;  %v5153_v47 = vpack.c.bf16 %v2838_v57, %v2831_v6  ;;  %v8060_v57 = vld [vmem:[#allocation84_spill] sm:$0xff]  ;;  %v5021_v44 = vpack.c.bf16 %v2064_v33, %v2057_v34  ;;  %v2085_v40 = vand.u32 4294901760, %v2084_v16  ;;  %v8069_v34 = vand.u32 4294901760, %v8068_v5 }
 0x1ca   :  { %5017 = vmatprep.subr.bf16.mxu0 %v7760_v28  ;;  %v2879_v37 = vsub.f32 %v8056_v25, %v8057_v14  ;;  %v2078_v2 = vand.u32 4294901760, %v2077_v51  ;;  %v8061_v6 = vand.u32 4294901760, %v8060_v57  ;;  %v8064_v51 = vld [vmem:[#allocation75_spill] sm:$0xff] }
 0x1cb   :  { %v8065_v4 = vand.u32 4294901760, %v8064_v51 }
 0x1cc   :  { %5154 = vmatpush3.bf16.msra.mxu1 %v5153_v47  ;;  %v2091_v61 = vsub.f32 %v8060_v57, %v8061_v6  ;;  %v2880_v47 = vand.u32 4294901760, %v2879_v37  ;;  %v5024_v33 = vpack.c.bf16 %v2078_v2, %v2071_v60  ;;  %v2907_v37 = vsub.f32 %v8068_v5, %v8069_v34 }
 0x1cd   :  { %5019 = vmatpush3.bf16.msra.mxu0 %v5018_v35  ;;  %5155 = vmatprep.subr.bf16.mxu1 %v7760_v28  ;;  %v5156_v35 = vpack.c.bf16 %v2852_v63, %v2845_v55  ;;  %v2893_v14 = vsub.f32 %v8064_v51, %v8065_v4  ;;  %v5159_v63 = vpack.c.bf16 %v2866_v29, %v2859_v3  ;;  %v8072_v3 = vld [vmem:[#allocation87_spill] sm:$0xff] }
 0x1ce   :  { %5020 = vmatprep.subr.bf16.mxu0 %v7760_v28  ;;  %v2092_v6 = vand.u32 4294901760, %v2091_v61  ;;  %v5162_v16 = vpack.c.bf16 %v2880_v47, %v2873_v43  ;;  %v2908_v2 = vand.u32 4294901760, %v2907_v37  ;;  %v8073_v60 = vand.u32 4294901760, %v8072_v3  ;;  %v8076_v47 = vld [vmem:[#allocation46_spill] sm:$0xff]  ;;  %v8077_v43 = vld [vmem:[#allocation47_spill] sm:$0xff] }
 0x1cf   :  { %v2894_v55 = vand.u32 4294901760, %v2893_v14 }
 0x1d0   :  { %5157 = vmatpush3.bf16.msra.mxu1 %v5156_v35  ;;  %v5027_v61 = vpack.c.bf16 %v2092_v6, %v2085_v40  ;;  %v2921_v14 = vsub.f32 %v8072_v3, %v8073_v60  ;;  %v8078_v6 = vpack.c.bf16 %v8076_v47, %v8077_v43  ;;  %v5033_v40 = vpack.c.bf16 %v8013_v62, %v8015_v19  ;;  %v8079_v19 = vld [vmem:[#allocation53_spill] sm:$0xff] }
 0x1d1   :  { %5022 = vmatpush3.bf16.msra.mxu0 %v5021_v44  ;;  %5158 = vmatprep.subr.bf16.mxu1 %v7760_v28  ;;  %v8070_v44 = vld [vmem:[#allocation82_spill] sm:$0xff]  ;;  %v5165_v34 = vpack.c.bf16 %v2894_v55, %v2887_v31  ;;  %v5036_v55 = vpack.c.bf16 %v6653_v12, %v6658_v53  ;;  %v5039_v62 = vpack.c.bf16 %v6669_v32, %v6674_v50  ;;  %v8098_v60 = vld [vmem:[#allocation69_spill] sm:$0xff] }
 0x1d2   :  { %5023 = vmatprep.subr.bf16.mxu0 %v7760_v28  ;;  %v8071_v35 = vand.u32 4294901760, %v8070_v44  ;;  %v2922_v37 = vand.u32 4294901760, %v2921_v14  ;;  %v5177_v12 = vpack.c.bf16 %v6634_v9, %v6639_v20  ;;  %v5042_v53 = vpack.c.bf16 %v6727_v8, %v8037_v7  ;;  %v8099_v14 = vld [vmem:[#allocation83_spill] sm:$0xff] }
 0x1d3   :  { %v5180_v50 = vpack.c.bf16 %v8039_v15, %v8041_v42  ;;  %v5045_v32 = vpack.c.bf16 %v8043_v45, %v8045_v36  ;;  %v5183_v20 = vpack.c.bf16 %v8047_v38, %v8049_v52  ;;  %v5048_v9 = vpack.c.bf16 %v8052_v48, %v8054_v27  ;;  %v8082_v45 = vld [vmem:[#allocation40_spill] sm:$0xff]  ;;  %v8086_v27 = vld [vmem:[#allocation41_spill] sm:$0xff] }
 0x1d4   :  { %5160 = vmatpush3.bf16.msra.mxu1 %v5159_v63  ;;  %v2900_v4 = vsub.f32 %v8070_v44, %v8071_v35  ;;  %v5186_v8 = vpack.c.bf16 %v8056_v25, %v8058_v59  ;;  %v5051_v7 = vpack.c.bf16 %v8060_v57, %v8062_v26  ;;  %v5189_v15 = vpack.c.bf16 %v8064_v51, %v8066_v0  ;;  %v8087_v25 = vld [vmem:[#allocation66_spill] sm:$0xff]  ;;  %v8088_v59 = vld [vmem:[#allocation39_spill] sm:$0xff] }
 0x1d5   :  { %5025 = vmatpush3.bf16.msra.mxu0 %v5024_v33  ;;  %5161 = vmatprep.subr.bf16.mxu1 %v7760_v28  ;;  %v8074_v33 = vld [vmem:[#allocation88_spill] sm:$0xff]  ;;  %v5192_v42 = vpack.c.bf16 %v8068_v5, %v8070_v44  ;;  %v8083_v36 = vand.u32 4294901760, %v8077_v43  ;;  %v8084_v38 = vand.u32 4294901760, %v8076_v47  ;;  %v8085_v48 = vand.u32 4294901760, %v7142_v49  ;;  %v8090_v57 = vld [vmem:[#allocation55_spill] sm:$0xff]  ;;  %v8104_v47 = vld [vmem:[#allocation86_spill] sm:$0xff] }
 0x1d6   :  { %5026 = vmatprep.subr.bf16.mxu0 %v7760_v28  ;;  %v2901_v29 = vand.u32 4294901760, %v2900_v4  ;;  %v8075_v41 = vand.u32 4294901760, %v8074_v33  ;;  %v5195_v0 = vpack.c.bf16 %v8072_v3, %v8074_v33  ;;  %v8092_v51 = vand.u32 4294901760, %v8079_v19  ;;  %v8096_v3 = vld [vmem:[#allocation68_spill] sm:$0xff] }
 0x1d7   :  { %v5078_v52 = vpack.c.bf16 %v8084_v38, %v8083_v36  ;;  %v8093_v44 = vand.u32 4294901760, %v7210_v22 }
 0x1d8   :  { %5163 = vmatpush3.bf16.msra.mxu1 %v5162_v16  ;;  %v2914_v63 = vsub.f32 %v8074_v33, %v8075_v41  ;;  %v5168_v4 = vpack.c.bf16 %v2908_v2, %v2901_v29  ;;  %v8094_v2 = vld [vmem:[#allocation67_spill] sm:$0xff]  ;;  %v8095_v29 = vld [vmem:[#allocation38_spill] sm:$0xff]  ;;  %v8100_v33 = vld [vmem:[#allocation72_spill] sm:$0xff] }
 0x1d9   :  { %5028 = vmatpush3.bf16.msra.mxu0 %v5027_v61  ;;  %5164 = vmatprep.subr.bf16.mxu1 %v7760_v28  ;;  %v8080_v61 = vld [vmem:[#allocation52_spill] sm:$0xff]  ;;  %v8101_v41 = vld [vmem:[#allocation89_spill] sm:$0xff] }
 0x1da   :  { %5029 = vmatprep.subr.bf16.mxu0 %v7760_v28  ;;  %v2915_v35 = vand.u32 4294901760, %v2914_v63  ;;  %v8081_v16 = vpack.c.bf16 %v8079_v19, %v8080_v61  ;;  %v8091_v26 = vand.u32 4294901760, %v8080_v61  ;;  %v8102_v63 = vld [vmem:[#allocation31_spill] sm:$0xff] }
 0x1dc   :  { %4341 = vmatmul.mubr.f32.vlgmr.msra.gmra.mrb[2].mxu0 %v7117_v21  ;;  %5166 = vmatpush3.bf16.msra.mxu1 %v5165_v34  ;;  %v5171_v31 = vpack.c.bf16 %v2922_v37, %v2915_v35  ;;  %v5222_v5 = vpack.c.bf16 %v8092_v51, %v8091_v26  ;;  %v8103_v34 = vld [vmem:[#allocation80_spill] sm:$0xff] }
 0x1dd   :  { %5031 = vmatpush3.bf16.msra.mxu0 %v8078_v6  ;;  %5167 = vmatprep.subr.bf16.mxu1 %v7760_v28 }
 0x1de   :  { %5032 = vmatprep.subr.bf16.mxu0 %v7760_v28  ;;  %4375 = vmatprep.mubr.msk.f32.mxu0 %vm5406_vm0, %v7758_v18 }
 0x1e0   :  { %5169 = vmatpush3.bf16.msra.mxu1 %v5168_v4 }
 0x1e1   :  { %5034 = vmatpush3.bf16.msra.mxu0 %v5033_v40  ;;  %5170 = vmatprep.subr.bf16.mxu1 %v7760_v28 }
 0x1e2   :  { %5035 = vmatprep.subr.bf16.mxu0 %v7760_v28 }
 0x1e4   :  { %5172 = vmatpush3.bf16.msra.mxu1 %v5171_v31 }
 0x1e5   :  { %5037 = vmatpush3.bf16.msra.mxu0 %v5036_v55  ;;  %5173 = vmatprep.subr.bf16.mxu1 %v7760_v28 }
 0x1e6   :  { %5038 = vmatprep.subr.bf16.mxu0 %v7760_v28 }
 0x1e7   :  { %4551 = vmatmul.mubr.f32.vlgmr.msra.gmra.mrb[2].mxu1 %v7180_v24 }
 0x1e8   :  { %5175 = vmatpush3.bf16.msra.mxu1 %v8081_v16  ;;  %4585 = vmatprep.mubr.msk.f32.mxu1 %vm5406_vm0, %v7758_v18 }
 0x1e9   :  { %5040 = vmatpush3.bf16.msra.mxu0 %v5039_v62  ;;  %5176 = vmatprep.subr.bf16.mxu1 %v7760_v28 }
 0x1ea   :  { %5041 = vmatprep.subr.bf16.mxu0 %v7760_v28 }
 0x1ec   :  { %5178 = vmatpush3.bf16.msra.mxu1 %v5177_v12 }
 0x1ed   :  { %5043 = vmatpush3.bf16.msra.mxu0 %v5042_v53  ;;  %5179 = vmatprep.subr.bf16.mxu1 %v7760_v28 }
 0x1ee   :  { %5044 = vmatprep.subr.bf16.mxu0 %v7760_v28 }
 0x1f0   :  { %5181 = vmatpush3.bf16.msra.mxu1 %v5180_v50 }
 0x1f1   :  { %5046 = vmatpush3.bf16.msra.mxu0 %v5045_v32  ;;  %5182 = vmatprep.subr.bf16.mxu1 %v7760_v28 }
 0x1f2   :  { %5047 = vmatprep.subr.bf16.mxu0 %v7760_v28 }
 0x1f4   :  { %5184 = vmatpush3.bf16.msra.mxu1 %v5183_v20 }
 0x1f5   :  { %5049 = vmatpush3.bf16.msra.mxu0 %v5048_v9  ;;  %5185 = vmatprep.subr.bf16.mxu1 %v7760_v28 }
 0x1f6   :  { %5050 = vmatprep.subr.bf16.mxu0 %v7760_v28 }
 0x1f8   :  { %5187 = vmatpush3.bf16.msra.mxu1 %v5186_v8 }
 0x1f9   :  { %5052 = vmatpush3.bf16.msra.mxu0 %v5051_v7  ;;  %5188 = vmatprep.subr.bf16.mxu1 %v7760_v28 }
 0x1fa   :  { %5053 = vmatprep.subr.bf16.mxu0 %v7760_v28 }
 0x1fc   :  { %4376 = vmatmul.mubr.f32.vlgmr.msra.gmra.mrb[2].mxu0 %v7142_v49  ;;  %5190 = vmatpush3.bf16.msra.mxu1 %v5189_v15  ;;  %v8089_v49 = vld [vmem:[#allocation37_spill] sm:$0xff] }
 0x1fd   :  { %5055 = vmatpush3.bf16.msra.mxu0 %v7060_v39  ;;  %5191 = vmatprep.subr.bf16.mxu1 %v7760_v28 }
 0x1fe   :  { %5056 = vmatprep.subr.bf16.mxu0 %v7760_v28  ;;  %4410 = vmatprep.mubr.msk.f32.mxu0 %vm5406_vm0, %v7758_v18 }
 0x200   :  { %5193 = vmatpush3.bf16.msra.mxu1 %v5192_v42 }
 0x201   :  { %5058 = vmatpush3.bf16.msra.mxu0 %v7071_v56  ;;  %5194 = vmatprep.subr.bf16.mxu1 %v7760_v28 }
 0x202   :  { %5059 = vmatprep.subr.bf16.mxu0 %v7760_v28 }
 0x204   :  { %5196 = vmatpush3.bf16.msra.mxu1 %v5195_v0 }
 0x205   :  { %5061 = vmatpush3.bf16.msra.mxu0 %v7086_v58  ;;  %5197 = vmatprep.subr.bf16.mxu1 %v7760_v28 }
 0x206   :  { %5062 = vmatprep.subr.bf16.mxu0 %v7760_v28 }
 0x207   :  { %4586 = vmatmul.mubr.f32.vlgmr.msra.gmra.mrb[2].mxu1 %v7210_v22  ;;  %v8097_v22 = vld [vmem:[#allocation77_spill] sm:$0xff] }
 0x208   :  { %5199 = vmatpush3.bf16.msra.mxu1 %v7096_v13  ;;  %4620 = vmatprep.mubr.msk.f32.mxu1 %vm5406_vm0, %v7758_v18 }
 0x209   :  { %5064 = vmatpush3.bf16.msra.mxu0 %v7106_v11  ;;  %5200 = vmatprep.subr.bf16.mxu1 %v7760_v28 }
 0x20a   :  { %5065 = vmatprep.subr.bf16.mxu0 %v7760_v28 }
 0x20c   :  { %5202 = vmatpush3.bf16.msra.mxu1 %v7125_v10 }
 0x20d   :  { %5067 = vmatpush3.bf16.msra.mxu0 %v7113_v46  ;;  %5203 = vmatprep.subr.bf16.mxu1 %v7760_v28 }
 0x20e   :  { %5068 = vmatprep.subr.bf16.mxu0 %v7760_v28 }
 0x210   :  { %5205 = vmatpush3.bf16.msra.mxu1 %v7151_v1 }
 0x211   :  { %5070 = vmatpush3.bf16.msra.mxu0 %v7136_v54  ;;  %5206 = vmatprep.subr.bf16.mxu1 %v7760_v28 }
 0x212   :  { %5071 = vmatprep.subr.bf16.mxu0 %v7760_v28 }
 0x214   :  { %5208 = vmatpush3.bf16.msra.mxu1 %v7170_v23 }
 0x215   :  { %5073 = vmatpush3.bf16.msra.mxu0 %v7158_v17  ;;  %5209 = vmatprep.subr.bf16.mxu1 %v7760_v28 }
 0x216   :  { %5074 = vmatprep.subr.bf16.mxu0 %v7760_v28 }
 0x218   :  { %5211 = vmatpush3.bf16.msra.mxu1 %v8082_v45 }
 0x219   :  { %5076 = vmatpush3.bf16.msra.mxu0 %v7176_v30  ;;  %5212 = vmatprep.subr.bf16.mxu1 %v7760_v28 }
 0x21a   :  { %5077 = vmatprep.subr.bf16.mxu0 %v7760_v28 }
 0x21c   :  { %4411 = vmatmul.mubr.f32.vlgmr.msra.gmra.mrb[2].mxu0 %v8085_v48  ;;  %5214 = vmatpush3.bf16.msra.mxu1 %v8086_v27 }
 0x21d   :  { %5079 = vmatpush3.bf16.msra.mxu0 %v5078_v52  ;;  %5215 = vmatprep.subr.bf16.mxu1 %v7760_v28 }
 0x21e   :  { %5080 = vmatprep.subr.bf16.mxu0 %v7760_v28  ;;  %4445 = vmatprep.mubr.msk.f32.mxu0 %vm5406_vm0, %v7758_v18 }
 0x220   :  { %5217 = vmatpush3.bf16.msra.mxu1 %v8088_v59 }
 0x221   :  { %5082 = vmatpush3.bf16.msra.mxu0 %v8087_v25  ;;  %5218 = vmatprep.subr.bf16.mxu1 %v7760_v28 }
 0x222   :  { %5083 = vmatprep.subr.bf16.mxu0 %v7760_v28 }
 0x224   :  { %5220 = vmatpush3.bf16.msra.mxu1 %v8090_v57 }
 0x225   :  { %5085 = vmatpush3.bf16.msra.mxu0 %v8089_v49  ;;  %5221 = vmatprep.subr.bf16.mxu1 %v7760_v28 }
 0x226   :  { %5086 = vmatprep.subr.bf16.mxu0 %v7760_v28 }
 0x227   :  { %4621 = vmatmul.mubr.f32.vlgmr.msra.gmra.mrb[2].mxu1 %v8093_v44 }
 0x228   :  { %5223 = vmatpush3.bf16.msra.mxu1 %v5222_v5  ;;  %4655 = vmatprep.mubr.msk.f32.mxu1 %vm5406_vm0, %v7758_v18 }
 0x229   :  { %5088 = vmatpush3.bf16.msra.mxu0 %v8094_v2  ;;  %5224 = vmatprep.subr.bf16.mxu1 %v7760_v28 }
 0x22a   :  { %5089 = vmatprep.subr.bf16.mxu0 %v7760_v28 }
 0x22c   :  { %5226 = vmatpush3.bf16.msra.mxu1 %v8096_v3 }
 0x22d   :  { %5091 = vmatpush3.bf16.msra.mxu0 %v8095_v29  ;;  %5227 = vmatprep.subr.bf16.mxu1 %v7760_v28 }
 0x22e   :  { %5092 = vmatprep.subr.bf16.mxu0 %v7760_v28 }
 0x230   :  { %5229 = vmatpush3.bf16.msra.mxu1 %v8098_v60 }
 0x231   :  { %5094 = vmatpush3.bf16.msra.mxu0 %v8097_v22  ;;  %5230 = vmatprep.subr.bf16.mxu1 %v7760_v28 }
 0x232   :  { %5095 = vmatprep.subr.bf16.mxu0 %v7760_v28 }
 0x234   :  { %5232 = vmatpush3.bf16.msra.mxu1 %v8100_v33 }
 0x235   :  { %5097 = vmatpush3.bf16.msra.mxu0 %v8099_v14  ;;  %5233 = vmatprep.subr.bf16.mxu1 %v7760_v28 }
 0x236   :  { %5098 = vmatprep.subr.bf16.mxu0 %v7760_v28 }
 0x238   :  { %5235 = vmatpush3.bf16.msra.mxu1 %v8102_v63 }
 0x239   :  { %5100 = vmatpush3.bf16.msra.mxu0 %v8101_v41  ;;  %5236 = vmatprep.subr.bf16.mxu1 %v7760_v28 }
 0x23a   :  { %5101 = vmatprep.subr.bf16.mxu0 %v7760_v28 }
 0x23c   :  { %4446 = vmatmul.mubr.f32.vlgmr.msra.gmra.mrb[2].mxu0 %v7117_v21  ;;  %5238 = vmatpush3.bf16.msra.mxu1 %v8103_v34 }
 0x23d   :  { %5103 = vmatpush3.bf16.msra.mxu0 %v7060_v39  ;;  %5239 = vmatprep.subr.bf16.mxu1 %v7760_v28  ;;  %v8105_v39 = vld [vmem:[#allocation29_spill] sm:$0xff] }
 0x23e   :  { %5104 = vmatprep.subr.bf16.mxu0 %v7760_v28  ;;  %4480 = vmatprep.mubr.msk.f32.mxu0 %vm5406_vm0, %v7758_v18 }
 0x240   :  { %5241 = vmatpush3.bf16.msra.mxu1 %v8104_v47 }
 0x241   :  { %5106 = vmatpush3.bf16.msra.mxu0 %v7071_v56  ;;  %5242 = vmatprep.subr.bf16.mxu1 %v7760_v28 }
 0x242   :  { %5107 = vmatprep.subr.bf16.mxu0 %v7760_v28 }
 0x244   :  { %5244 = vmatpush3.bf16.msra.mxu1 %v8105_v39 }
 0x245   :  { %5109 = vmatpush3.bf16.msra.mxu0 %v7086_v58  ;;  %5245 = vmatprep.subr.bf16.mxu1 %v7760_v28 }
 0x246   :  { %5110 = vmatprep.subr.bf16.mxu0 %v7760_v28 }
 0x247   :  { %4656 = vmatmul.mubr.f32.vlgmr.msra.gmra.mrb[2].mxu1 %v7180_v24 }
 0x248   :  { %5247 = vmatpush3.bf16.msra.mxu1 %v7096_v13  ;;  %4690 = vmatprep.mubr.msk.f32.mxu1 %vm5406_vm0, %v7758_v18  ;;  %vm3374_vm0 = vcmask 261120  }
 0x249   :  { %5112 = vmatpush3.bf16.msra.mxu0 %v7106_v11  ;;  %5248 = vmatprep.subr.bf16.mxu1 %v7760_v28 }
 0x24a   :  { %5113 = vmatprep.subr.bf16.mxu0 %v7760_v28 }
 0x24c   :  { %5250 = vmatpush3.bf16.msra.mxu1 %v7125_v10 }
 0x24d   :  { %5115 = vmatpush3.bf16.msra.mxu0 %v7113_v46  ;;  %5251 = vmatprep.subr.bf16.mxu1 %v7760_v28 }
 0x24e   :  { %5116 = vmatprep.subr.bf16.mxu0 %v7760_v28 }
 0x250   :  { %5253 = vmatpush3.bf16.msra.mxu1 %v7151_v1 }
 0x251   :  { %5118 = vmatpush3.bf16.msra.mxu0 %v7136_v54  ;;  %5254 = vmatprep.subr.bf16.mxu1 %v7760_v28 }
 0x252   :  { %5119 = vmatprep.subr.bf16.mxu0 %v7760_v28 }
 0x254   :  { %5256 = vmatpush3.bf16.msra.mxu1 %v7170_v23 }
 0x255   :  { %5121 = vmatpush3.bf16.msra.mxu0 %v7158_v17  ;;  %5257 = vmatprep.subr.bf16.mxu1 %v7760_v28 }
 0x256   :  { %5122 = vmatprep.subr.bf16.mxu0 %v7760_v28 }
 0x258   :  { %5259 = vmatpush3.bf16.msra.mxu1 %v8082_v45 }
 0x259   :  { %5124 = vmatpush3.bf16.msra.mxu0 %v7176_v30  ;;  %5260 = vmatprep.subr.bf16.mxu1 %v7760_v28 }
 0x25c   :  { %4481 = vmatmul.mubr.f32.vlgmr.msra.gmra.mrb[2].mxu0 %v7117_v21  ;;  %5262 = vmatpush3.bf16.msra.mxu1 %v8086_v27 }
 0x25d   :  { %5263 = vmatprep.subr.bf16.mxu1 %v7760_v28 }
 0x260   :  { %5265 = vmatpush3.bf16.msra.mxu1 %v8088_v59 }
 0x261   :  { %5266 = vmatprep.subr.bf16.mxu1 %v7760_v28 }
 0x264   :  { %5268 = vmatpush3.bf16.msra.mxu1 %v8090_v57 }
 0x267   :  { %4691 = vmatmul.mubr.f32.vlgmr.msra.gmra.mrb[2].mxu1 %v7180_v24 }
 0x26e   :  { %v852_v18 = vpop.f32.mrb[0].mxu0 }
 0x26f   :  { %v4062_v56 = vpop.f32.mrb[1].mxu0 }
 0x27a   :  { %v1698_v58 = vpop.f32.mrb[0].mxu1 }
 0x27b   :  { %3363 = vrot.lane.b32.xlu0 %v1698_v58, %s5409_s7  ;;  %v4272_v13 = vpop.f32.mrb[1].mxu1 }
 0x2ed   :  { %v3364_v28 = vpop.permute.xlu0 %3363 }
 0x2ee   :  { %v3375_v1 = vsel %vm3374_vm0, %v852_v18, %v3364_v28 }
 0x32f   :  { %v2528_v11 = vpop.f32.mrb[2].mxu0 }
 0x330   :  { %3367 = vrot.lane.b32.xlu1 %v2528_v11, %s5408_s6  ;;  %v4482_v46 = vpop.f32.mrb[3].mxu0 }
 0x33a   :  { %v3358_v21 = vpop.f32.mrb[2].mxu1 }
 0x33b   :  { %3371 = vrot.lane.b32.xlu0 %v3358_v21, %s5404_s28  ;;  %v4692_v10 = vpop.f32.mrb[3].mxu1 }
 0x3a2   :  { %v3368_v54 = vpop.permute.xlu1 %3367 }
 0x3a3   :  { %v3377_v17 = vsel %vm3376_vm15, %v3375_v1, %v3368_v54 }
 0x3ad   :  { %v3372_v23 = vpop.permute.xlu0 %3371 }
 0x3ae   :  { %v3379_v30 = vsel %vm3378_vm4, %v3377_v17, %v3372_v23 }
 0x3af   :  { %3384 = vst [vmem:[#allocation8] sm:$0xff] %v3379_v30 }
 0x3b0   :  { %5381 = shalt.err (!%p5378_p8)
}
 0x3b1   :  { %s5382_s13 = scalar_lea.hbm %s7530_s4, 128 }
 0x3b2   :  { %p5383_p9 = scmp.ne.s32.totalorder %s7530_s4, %s5382_s13  ;;  %p5386_p10 = scmp.lt.u32.totalorder %s5382_s13, %s7530_s4 }
 0x3b4   :  { %p5388_p11 = pnand %p5386_p10, %p5383_p9 }
 0x3b6   :  { %5391 = shalt.err (!%p5388_p11)
}
 0x3b7   :  { %3401 = dma.vmem_to_hbm [thread:$0]  %s3399_s9, 128, %s7530_s4, [#allocation7]  }
 0x3b8   :  { %5396 = dma.done.wait [#allocation7], 128  }
 0x3b9   :  { %5397 = vsyncadd [#allocation7], 4294967168 }
 0x3ba   :  { %3405 = vsyncpa [#allocation6], 1 }
 0x3bb   :  { %3406 = vsyncpa [#allocation7], 1 }

</bundles_post_ra>
